<compile_context>
chip_gen: v5e
topology: v5e:2x2
jax: 0.10.0
libtpu: 0.0.40
codegen_flags: <defaults>
</compile_context>

<pallas_src>
import functools

import jax
import jax.numpy as jnp
from jax.experimental import pallas as pl
from jax.experimental.pallas import tpu as pltpu

SUBLANES_BF16 = 16   # pad input channels (contraction dim) to the bf16 sublane tile


def _round_up(x, m):
    return (x + m - 1) // m * m


def _pick_row_tile(oh, ow, m_target):
    """Largest divisor TH of OH with TH*OW <= m_target and (TH*OW) % 128 == 0.

    The %128 requirement keeps the transposed (OC, m_tile) output block lane-dense and the
    activation blocks (8,128)-tiled.  Falls back to one whole image per grid step otherwise.
    """
    best = None
    for th in range(1, oh + 1):
        if oh % th:
            continue
        m = th * ow
        if m <= m_target and m % 128 == 0:
            best = th
    if best is None:
        # TODO(synk): odd OH/OW shapes fall back to whole-image tiles (less pipelining).
        best = oh
    return best


def _im2col_matmul(x_ref, w_ref, r0, *, kh, kw, th, ow, stride, cp):
    """One output-row tile of the convolution as a single MXU matmul.

    x_ref: (HP, WP, CP) bf16 padded image, resident in VMEM.
    w_ref: (KH*KW*CP, OCP) bf16 weights (tap-major, channel-minor).
    r0:    first padded input row of this row tile (dynamic).
    Returns (TH*OW, OCP) float32.
    """
    rows = (th - 1) * stride + 1
    cols = (ow - 1) * stride + 1
    taps = []
    for i in range(kh):                  # static unroll: gathers only, no per-tap matmul
        for j in range(kw):
            xs = x_ref[pl.ds(r0 + i, rows), j:j + cols, :]
            if stride != 1:              # demo uses stride=1 (plain slice)
                xs = xs[::stride, ::stride, :]          # (TH, OW, CP)
            taps.append(xs.reshape(th * ow, cp))
    col = jnp.concatenate(taps, axis=-1)                # (TH*OW, KH*KW*CP): K folded to 144
    return jnp.dot(col, w_ref[...], preferred_element_type=jnp.float32)


def conv_stats_kernel(x_ref, w_ref, y_ref, stats_ref, *, kh, kw, th, ow, stride, cp):
    """Pass 1: conv row tile -> bf16 activation in HBM + per-tile BN partial sums."""
    r0 = pl.program_id(1) * th * stride
    acc = _im2col_matmul(x_ref, w_ref, r0, kh=kh, kw=kw, th=th, ow=ow, stride=stride, cp=cp)
    y = acc.astype(y_ref.dtype)                         # bf16 activation (halves HBM traffic)
    y_ref[...] = y
    yf = y.astype(jnp.float32)                          # stats over exactly what pass 2 reads
    s1 = jnp.sum(yf, axis=0, keepdims=True)             # (1, OCP)
    s2 = jnp.sum(yf * yf, axis=0, keepdims=True)        # (1, OCP)
    stats_ref[...] = jnp.concatenate([s1, s2], axis=0)  # (2, OCP)


def bn_relu_kernel(y_ref, scale_ref, shift_ref, o_ref, *, oc):
    """Pass 2: pure-VPU BN affine + ReLU; store channel-major so only real channels hit HBM."""
    y = y_ref[...].astype(jnp.float32) * scale_ref[...] + shift_ref[...]
    y = jnp.maximum(y, 0.0)
    o_ref[...] = y.T[:oc, :].astype(o_ref.dtype)        # (OC, m_tile): lane-dense spatial axis


def conv_layer_forward(x, weight, bias, gamma, beta, *, stride, padding, eps=1e-5,
                       m_target=1024):
    # Training-mode BN subtracts the batch mean, so the conv bias cancels exactly -> drop it.
    del bias
    n, c, h, w = x.shape
    oc, _, kh, kw = weight.shape
    oh = (h + 2 * padding - kh) // stride + 1
    ow = (w + 2 * padding - kw) // stride + 1
    hp, wp = h + 2 * padding, w + 2 * padding
    cp = _round_up(c, SUBLANES_BF16)                    # contraction padding (bf16 sublanes)
    # Lane-dense output channels; 256-wide N fills the v6e/v7x MXU once OC is large enough.
    ocp = _round_up(oc, 256) if oc > 128 else _round_up(oc, 128)
    k_tot = kh * kw * cp                                # folded contraction depth (demo: 144)
    m_img = oh * ow
    m_total = n * m_img
    th = _pick_row_tile(oh, ow, m_target)
    nrt = oh // th
    m_tile = th * ow

    # ---- cheap XLA-side layout prep (input-sized; no 9x im2col expansion in HBM) ----
    # TODO(synk): try CompilerParams(allow_input_fusion=...) to fuse this pad/cast into pass 1.
    x_nhwc = jnp.transpose(x, (0, 2, 3, 1))
    x_pad = jnp.pad(x_nhwc, ((0, 0), (padding, padding), (padding, padding), (0, cp - c)))
    x_pad = x_pad.astype(jnp.bfloat16)                                    # (N, HP, WP, CP)
    # Weights tap-major / channel-minor so the K ordering matches the in-kernel concat.
    w_t = jnp.transpose(weight, (2, 3, 1, 0))                             # (KH, KW, C, OC)
    w_t = jnp.pad(w_t, ((0, 0), (0, 0), (0, cp - c), (0, ocp - oc)))
    w_flat = w_t.reshape(k_tot, ocp).astype(jnp.bfloat16)                 # (KH*KW*CP, OCP)
    gamma_p = jnp.pad(gamma.astype(jnp.float32), (0, ocp - oc))
    beta_p = jnp.pad(beta.astype(jnp.float32), (0, ocp - oc))

    cparams = pltpu.CompilerParams(
        dimension_semantics=("parallel", "parallel"),   # all blocks written once; v7x: 2 TCs
        vmem_limit_bytes=48 * 1024 * 1024,              # fits v7x's 64 MiB VMEM with headroom
    )
    x_spec = pl.BlockSpec((None, hp, wp, cp), lambda b, t: (b, 0, 0, 0))  # image stays resident
    w_spec = pl.BlockSpec((k_tot, ocp), lambda b, t: (0, 0))              # weights stay resident

    # ---- pass 1: conv (one K=KH*KW*CP matmul per row tile) + bf16 activation + BN partials ----
    y_act, stats = pl.pallas_call(
        functools.partial(conv_stats_kernel, kh=kh, kw=kw, th=th, ow=ow, stride=stride, cp=cp),
        out_shape=(jax.ShapeDtypeStruct((n, m_img, ocp), jnp.bfloat16),
                   jax.ShapeDtypeStruct((n, nrt, 2, ocp), jnp.float32)),
        grid_spec=pltpu.PrefetchScalarGridSpec(
            num_scalar_prefetch=0,
            grid=(n, nrt),
            in_specs=[x_spec, w_spec],
            out_specs=[pl.BlockSpec((None, m_tile, ocp), lambda b, t: (b, t, 0)),
                       pl.BlockSpec((None, None, 2, ocp), lambda b, t: (b, t, 0, 0))],
        ),
        compiler_params=cparams,
    )(x_pad, w_flat)

    # ---- tiny JAX: combine partial stats -> BN scale/shift (biased variance, PyTorch-style) ----
    # TODO(synk): E[x^2]-E[x]^2 cancels badly when |mean| >> std; use a Welford-style combine of
    # per-tile (count, mean, M2) partials for production use.
    tot = jnp.sum(stats, axis=(0, 1))                   # (2, OCP)
    mean = tot[0] / m_total
    var = jnp.maximum(tot[1] / m_total - mean * mean, 0.0)
    inv = gamma_p * jax.lax.rsqrt(var + eps)
    scale = inv.reshape(1, ocp)
    shift = (beta_p - mean * inv).reshape(1, ocp)

    # ---- pass 2: pure-VPU affine + ReLU epilogue; only real channels are written, NCHW-ready ----
    # TODO(synk): on v5e (low HBM BW) a shape-dependent switch back to conv recompute can win when
    # C*KH*KW is tiny; the read-activation epilogue kept here is the win on v6e/v7x.
    out_nc = pl.pallas_call(
        functools.partial(bn_relu_kernel, oc=oc),
        out_shape=jax.ShapeDtypeStruct((n, oc, m_img), jnp.float32),
        grid_spec=pltpu.PrefetchScalarGridSpec(
            num_scalar_prefetch=0,
            grid=(n, nrt),
            in_specs=[pl.BlockSpec((None, m_tile, ocp), lambda b, t: (b, t, 0)),
                      pl.BlockSpec((1, ocp), lambda b, t: (0, 0)),
                      pl.BlockSpec((1, ocp), lambda b, t: (0, 0))],
            out_specs=pl.BlockSpec((None, oc, m_tile), lambda b, t: (b, 0, t)),
        ),
        compiler_params=cparams,
    )(y_act, scale, shift)

    # Metadata-only reshape to NCHW: no slice / transpose pass over the output in HBM.
    return out_nc.reshape(n, oc, oh, ow)


def reference(x, weight, bias, gamma, beta, *, stride, padding, eps=1e-5):
    conv = jax.lax.conv_general_dilated(
        x, weight, window_strides=(stride, stride),
        padding=[(padding, padding), (padding, padding)],
        dimension_numbers=("NCHW", "OIHW", "NCHW"),
        precision=jax.lax.Precision.HIGHEST)
    conv = conv + bias.reshape(1, -1, 1, 1)
    mean = conv.mean(axis=(0, 2, 3), keepdims=True)
    var = conv.var(axis=(0, 2, 3), keepdims=True)   # biased, as PyTorch uses for normalization
    y = (conv - mean) / jnp.sqrt(var + eps) * gamma.reshape(1, -1, 1, 1) + beta.reshape(1, -1, 1, 1)
    return jnp.maximum(y, 0.0)


if __name__ == "__main__":
    # Small shapes consistent with the module: batch=2, in_channels=4, spatial=16,
    # out_channels=8, kernel_size=3, stride=1, padding=1.
    N, C, H, W = 2, 4, 16, 16
    OC, KH, KW = 8, 3, 3
    stride, padding = 1, 1

    key = jax.random.PRNGKey(0)
    kx, kw_, kb, kg, kbeta = jax.random.split(key, 5)
    x = jax.random.normal(kx, (N, C, H, W), dtype=jnp.float32)
    weight = jax.random.normal(kw_, (OC, C, KH, KW), dtype=jnp.float32) * 0.1
    bias = jax.random.normal(kb, (OC,), dtype=jnp.float32) * 0.1
    gamma = 1.0 + 0.1 * jax.random.normal(kg, (OC,), dtype=jnp.float32)
    beta = 0.1 * jax.random.normal(kbeta, (OC,), dtype=jnp.float32)

    # m_target=128 so the demo actually exercises the row-tiled grid (2 tiles/image, grid=(2,2));
    # realistic image sizes should use the larger default target.
    out = conv_layer_forward(x, weight, bias, gamma, beta,
                             stride=stride, padding=padding, m_target=128)
    out = jax.block_until_ready(out)

    ref = reference(x, weight, bias, gamma, beta, stride=stride, padding=padding)
    assert out.shape == (N, OC, H, W)
    # bf16 MXU inputs + bf16 intermediate activation (f32 accumulation / BN math) -> relaxed tol.
    assert jnp.allclose(out, ref, rtol=3e-2, atol=3e-2), "mismatch vs reference"

    print("KERNEL_OK")
</pallas_src>

<mosaic_0001>
module attributes {stable_mosaic.version = 11 : i64} {
  func.func @conv_stats_kernel(%arg0: i32, %arg1: i32, %arg2: memref<1x18x18x16xbf16, #tpu.memory_space<vmem>>, %arg3: memref<144x128xbf16, #tpu.memory_space<vmem>>, %arg4: memref<1x128x128xbf16, #tpu.memory_space<vmem>>, %arg5: memref<1x1x2x128xf32, #tpu.memory_space<vmem>>) attributes {dimension_semantics = [#tpu.dimension_semantics<parallel>, #tpu.dimension_semantics<parallel>], iteration_bounds = array<i64: 2, 2>, scalar_prefetch = 0 : i64, scratch_operands = 0 : i64, tpu.core_type = #tpu.core_type<tc>, window_params = [{transform_indices = @transform_0, window_bounds = array<i64: 1, 18, 18, 16>}, {pipeline_mode = #tpu.pipeline_mode<synchronous>, transform_indices = @transform_1, window_bounds = array<i64: 144, 128>}, {transform_indices = @transform_2, window_bounds = array<i64: 1, 128, 128>}, {transform_indices = @transform_3, window_bounds = array<i64: 1, 1, 2, 128>}]} {
    %c8_i32 = arith.constant 8 : i32
    %0 = arith.muli %arg1, %c8_i32 : i32
    %c1_i32 = arith.constant 1 : i32
    %1 = arith.muli %0, %c1_i32 : i32
    %c0_i32 = arith.constant 0 : i32
    %2 = arith.addi %1, %c0_i32 : i32
    %c0 = arith.constant 0 : index
    %3 = arith.index_cast %2 : i32 to index
    %c0_0 = arith.constant 0 : index
    %c0_1 = arith.constant 0 : index
    %4 = vector.load %arg2[%c0, %3, %c0_0, %c0_1] : memref<1x18x18x16xbf16, #tpu.memory_space<vmem>>, vector<1x8x16x16xbf16>
    %5 = vector.shape_cast %4 : vector<1x8x16x16xbf16> to vector<8x16x16xbf16>
    %6 = vector.shape_cast %5 : vector<8x16x16xbf16> to vector<128x16xbf16>
    %c0_i32_2 = arith.constant 0 : i32
    %7 = arith.addi %1, %c0_i32_2 : i32
    %c0_3 = arith.constant 0 : index
    %8 = arith.index_cast %7 : i32 to index
    %c1 = arith.constant 1 : index
    %c0_4 = arith.constant 0 : index
    %9 = vector.load %arg2[%c0_3, %8, %c1, %c0_4] : memref<1x18x18x16xbf16, #tpu.memory_space<vmem>>, vector<1x8x16x16xbf16>
    %10 = vector.shape_cast %9 : vector<1x8x16x16xbf16> to vector<8x16x16xbf16>
    %11 = vector.shape_cast %10 : vector<8x16x16xbf16> to vector<128x16xbf16>
    %c0_i32_5 = arith.constant 0 : i32
    %12 = arith.addi %1, %c0_i32_5 : i32
    %c0_6 = arith.constant 0 : index
    %13 = arith.index_cast %12 : i32 to index
    %c2 = arith.constant 2 : index
    %c0_7 = arith.constant 0 : index
    %14 = vector.load %arg2[%c0_6, %13, %c2, %c0_7] : memref<1x18x18x16xbf16, #tpu.memory_space<vmem>>, vector<1x8x16x16xbf16>
    %15 = vector.shape_cast %14 : vector<1x8x16x16xbf16> to vector<8x16x16xbf16>
    %16 = vector.shape_cast %15 : vector<8x16x16xbf16> to vector<128x16xbf16>
    %c1_i32_8 = arith.constant 1 : i32
    %17 = arith.addi %1, %c1_i32_8 : i32
    %c0_9 = arith.constant 0 : index
    %18 = arith.index_cast %17 : i32 to index
    %c0_10 = arith.constant 0 : index
    %c0_11 = arith.constant 0 : index
    %19 = vector.load %arg2[%c0_9, %18, %c0_10, %c0_11] : memref<1x18x18x16xbf16, #tpu.memory_space<vmem>>, vector<1x8x16x16xbf16>
    %20 = vector.shape_cast %19 : vector<1x8x16x16xbf16> to vector<8x16x16xbf16>
    %21 = vector.shape_cast %20 : vector<8x16x16xbf16> to vector<128x16xbf16>
    %c1_i32_12 = arith.constant 1 : i32
    %22 = arith.addi %1, %c1_i32_12 : i32
    %c0_13 = arith.constant 0 : index
    %23 = arith.index_cast %22 : i32 to index
    %c1_14 = arith.constant 1 : index
    %c0_15 = arith.constant 0 : index
    %24 = vector.load %arg2[%c0_13, %23, %c1_14, %c0_15] : memref<1x18x18x16xbf16, #tpu.memory_space<vmem>>, vector<1x8x16x16xbf16>
    %25 = vector.shape_cast %24 : vector<1x8x16x16xbf16> to vector<8x16x16xbf16>
    %26 = vector.shape_cast %25 : vector<8x16x16xbf16> to vector<128x16xbf16>
    %c1_i32_16 = arith.constant 1 : i32
    %27 = arith.addi %1, %c1_i32_16 : i32
    %c0_17 = arith.constant 0 : index
    %28 = arith.index_cast %27 : i32 to index
    %c2_18 = arith.constant 2 : index
    %c0_19 = arith.constant 0 : index
    %29 = vector.load %arg2[%c0_17, %28, %c2_18, %c0_19] : memref<1x18x18x16xbf16, #tpu.memory_space<vmem>>, vector<1x8x16x16xbf16>
    %30 = vector.shape_cast %29 : vector<1x8x16x16xbf16> to vector<8x16x16xbf16>
    %31 = vector.shape_cast %30 : vector<8x16x16xbf16> to vector<128x16xbf16>
    %c2_i32 = arith.constant 2 : i32
    %32 = arith.addi %1, %c2_i32 : i32
    %c0_20 = arith.constant 0 : index
    %33 = arith.index_cast %32 : i32 to index
    %c0_21 = arith.constant 0 : index
    %c0_22 = arith.constant 0 : index
    %34 = vector.load %arg2[%c0_20, %33, %c0_21, %c0_22] : memref<1x18x18x16xbf16, #tpu.memory_space<vmem>>, vector<1x8x16x16xbf16>
    %35 = vector.shape_cast %34 : vector<1x8x16x16xbf16> to vector<8x16x16xbf16>
    %36 = vector.shape_cast %35 : vector<8x16x16xbf16> to vector<128x16xbf16>
    %c2_i32_23 = arith.constant 2 : i32
    %37 = arith.addi %1, %c2_i32_23 : i32
    %c0_24 = arith.constant 0 : index
    %38 = arith.index_cast %37 : i32 to index
    %c1_25 = arith.constant 1 : index
    %c0_26 = arith.constant 0 : index
    %39 = vector.load %arg2[%c0_24, %38, %c1_25, %c0_26] : memref<1x18x18x16xbf16, #tpu.memory_space<vmem>>, vector<1x8x16x16xbf16>
    %40 = vector.shape_cast %39 : vector<1x8x16x16xbf16> to vector<8x16x16xbf16>
    %41 = vector.shape_cast %40 : vector<8x16x16xbf16> to vector<128x16xbf16>
    %c2_i32_27 = arith.constant 2 : i32
    %42 = arith.addi %1, %c2_i32_27 : i32
    %c0_28 = arith.constant 0 : index
    %43 = arith.index_cast %42 : i32 to index
    %c2_29 = arith.constant 2 : index
    %c0_30 = arith.constant 0 : index
    %44 = vector.load %arg2[%c0_28, %43, %c2_29, %c0_30] : memref<1x18x18x16xbf16, #tpu.memory_space<vmem>>, vector<1x8x16x16xbf16>
    %45 = vector.shape_cast %44 : vector<1x8x16x16xbf16> to vector<8x16x16xbf16>
    %46 = vector.shape_cast %45 : vector<8x16x16xbf16> to vector<128x16xbf16>
    %47 = tpu.concatenate %6, %11, %16, %21, %26, %31, %36, %41, %46 in 1 : vector<128x16xbf16>, vector<128x16xbf16>, vector<128x16xbf16>, vector<128x16xbf16>, vector<128x16xbf16>, vector<128x16xbf16>, vector<128x16xbf16>, vector<128x16xbf16>, vector<128x16xbf16> -> vector<128x144xbf16>
    %c0_31 = arith.constant 0 : index
    %c0_32 = arith.constant 0 : index
    %48 = vector.load %arg3[%c0_31, %c0_32] : memref<144x128xbf16, #tpu.memory_space<vmem>>, vector<144x128xbf16>
    %cst = arith.constant dense<0.000000e+00> : vector<128x128xf32>
    %49 = tpu.matmul %47, %48, %cst {dimension_numbers = #tpu.dot_dimension_numbers<[1], [0], [0], [1], [0, 0, 1, 1], [], []>} : vector<128x144xbf16>, vector<144x128xbf16>, vector<128x128xf32> -> vector<128x128xf32>
    %50 = arith.truncf %49 : vector<128x128xf32> to vector<128x128xbf16>
    %c0_33 = arith.constant 0 : index
    %c0_34 = arith.constant 0 : index
    %c0_35 = arith.constant 0 : index
    %51 = vector.load %arg4[%c0_33, %c0_34, %c0_35] : memref<1x128x128xbf16, #tpu.memory_space<vmem>>, vector<1x128x128xbf16>
    %52 = vector.shape_cast %51 : vector<1x128x128xbf16> to vector<128x128xbf16>
    %53 = vector.shape_cast %50 : vector<128x128xbf16> to vector<1x128x128xbf16>
    tpu.vector_store %arg4[%c0_33, %c0_34, %c0_35], %53 {strides = array<i32>} : memref<1x128x128xbf16, #tpu.memory_space<vmem>>, vector<1x128x128xbf16>,
    %54 = arith.extf %50 : vector<128x128xbf16> to vector<128x128xf32>
    %cst_36 = arith.constant dense<0.000000e+00> : vector<128xf32>
    %55 = vector.multi_reduction <add>, %54, %cst_36 [0] : vector<128x128xf32> to vector<128xf32>
    %56 = vector.shape_cast %55 : vector<128xf32> to vector<1x128xf32>
    %57 = arith.mulf %54, %54 : vector<128x128xf32>
    %cst_37 = arith.constant dense<0.000000e+00> : vector<128xf32>
    %58 = vector.multi_reduction <add>, %57, %cst_37 [0] : vector<128x128xf32> to vector<128xf32>
    %59 = vector.shape_cast %58 : vector<128xf32> to vector<1x128xf32>
    %60 = tpu.concatenate %56, %59 in 0 : vector<1x128xf32>, vector<1x128xf32> -> vector<2x128xf32>
    %c0_38 = arith.constant 0 : index
    %c0_39 = arith.constant 0 : index
    %c0_40 = arith.constant 0 : index
    %c0_41 = arith.constant 0 : index
    %61 = vector.load %arg5[%c0_38, %c0_39, %c0_40, %c0_41] : memref<1x1x2x128xf32, #tpu.memory_space<vmem>>, vector<1x1x2x128xf32>
    %62 = vector.shape_cast %61 : vector<1x1x2x128xf32> to vector<2x128xf32>
    %63 = vector.shape_cast %60 : vector<2x128xf32> to vector<1x1x2x128xf32>
    tpu.vector_store %arg5[%c0_38, %c0_39, %c0_40, %c0_41], %63 {strides = array<i32>} : memref<1x1x2x128xf32, #tpu.memory_space<vmem>>, vector<1x1x2x128xf32>,
    return
  }
  func.func @transform_0(%arg0: i32, %arg1: i32) -> (i32, i32, i32, i32) {
    %c0_i32 = arith.constant 0 : i32
    %c0_i32_0 = arith.constant 0 : i32
    %c0_i32_1 = arith.constant 0 : i32
    %c0_i32_2 = arith.constant 0 : i32
    return %arg0, %c0_i32, %c0_i32_0, %c0_i32_1 : i32, i32, i32, i32
  }
  func.func @transform_1(%arg0: i32, %arg1: i32) -> (i32, i32) {
    %c0_i32 = arith.constant 0 : i32
    %c0_i32_0 = arith.constant 0 : i32
    %c0_i32_1 = arith.constant 0 : i32
    return %c0_i32, %c0_i32_0 : i32, i32
  }
  func.func @transform_2(%arg0: i32, %arg1: i32) -> (i32, i32, i32) {
    %c0_i32 = arith.constant 0 : i32
    %c0_i32_0 = arith.constant 0 : i32
    return %arg0, %arg1, %c0_i32 : i32, i32, i32
  }
  func.func @transform_3(%arg0: i32, %arg1: i32) -> (i32, i32, i32, i32) {
    %c0_i32 = arith.constant 0 : i32
    %c0_i32_0 = arith.constant 0 : i32
    %c0_i32_1 = arith.constant 0 : i32
    return %arg0, %arg1, %c0_i32, %c0_i32_0 : i32, i32, i32, i32
  }
}

</mosaic_0001>

<bundles_post_ra>
// kernel: tpu_custom_call.1
= control target key start
LH: loop header
LB: loop body
LE: loop exit
PB: predicated region body
PF: predicated region fallthrough
CT: control target
= control target key end

     0   :  { %9 = vsyncpa [#allocation3], 0  ;;  %s3520_s0 = inlined_call_operand.vmem [shape: bf16[2,18,18,16], index: 0, kind: input, shape index: {}]   ;;  %s3521_s1 = inlined_call_operand.vmem [shape: bf16[144,128], index: 1, kind: input, shape index: {}]   ;;  %s3522_s2 = inlined_call_operand.hbm [shape: bf16[2,256,128], index: 2, kind: output, shape index: {0}]   ;;  %s3523_s3 = inlined_call_operand.hbm [shape: f32[2,2,2,128], index: 3, kind: output, shape index: {1}]  }
   0x1   :  { %11 = vsyncpa [#allocation3 + $0x1], 0 }
   0x2   :  { %12 = vsyncpa [#allocation5], 0 }
   0x3   :  { %14 = vsyncpa [#allocation5 + $0x1], 0  ;;  %s2665_s12 = smov 0   ;;  %s2667_s13 = smov 0  }
   0x4   :  { %s2669_s14 = smov 0   ;;  %s2671_s15 = smov 0  }
   0x5   :  { %s2673_s16 = smov 0   ;;  %s2675_s17 = smov 0  }
   0x6   :  { %s2677_s18 = smov 0   ;;  %s2679_s19 = smov 0  }
   0x7 LB: > { %s2078_s20 = sadd.s32 4294967295, %s2635_s19   ;;  %s2079_s21 = sadd.s32 4294967294, %s2635_s19   ;;  %s2635_s19 = sphi %s2679_s19, %s20_s19   ;;  %s2631_s18 = sphi %s2677_s18, %s3536_s18   ;;  %s2627_s17 = sphi %s2675_s17, %s3535_s17   ;;  %s2623_s16 = sphi %s2673_s16, %s3534_s16   ;;  %s2619_s15 = sphi %s2671_s15, %s3533_s15   ;;  %s2615_s14 = sphi %s2669_s14, %s3532_s14   ;;  %s2611_s13 = sphi %s2667_s13, %s3531_s13   ;;  %s2607_s12 = sphi %s2665_s12, %s3530_s12  }
   0x8   : > { %s29_s22 = sadd.s32 1, %s2627_s17  ;;  %s32_s23 = sadd.s32 1, %s2631_s18 }
   0x9   : > { %p30_p0 = scmp.ge.s32.totalorder %s29_s22, 2  ;;  %p98_p1 = scmp.ne.s32.totalorder %s2615_s14, %s2611_s13 }
   0xa   : > { %p99_p2 = scmp.eq.s32.totalorder %s2078_s20, 3  ;;  %p104_p5 = scmp.ne.s32.totalorder %s2611_s13, %s2607_s12 }
   0xb   : > { %s3538_s22 = smov (%p30_p0, %s29_s22), 0  ;;  %s3540_s23 = smov (!%p30_p0, %s32_s23), %s2631_s18 }
   0xc   : > { %s84_s24 = ssub.s32 %s2627_s17, %s3538_s22  ;;  %p2716_p3 = por %p99_p2, %p98_p1 }
   0xd   : > { %p34_p4 = scmp.ge.s32.totalorder %s3540_s23, 2  ;;  %p105_p6 = scmp.eq.s32.totalorder %s2079_s21, 3 }
   0xe   : > { %p2082_p7 = scmp.ge.s32.totalorder %s2635_s19, 1  ;;  %p162_p9 = scmp.lt.s32.totalorder %s2635_s19, 5 }
   0xf   : > { %s3542_s23 = smov (%p34_p4, %s3540_s23), 0  ;;  %p2725_p8 = por %p105_p6, %p104_p5 }
  0x10   : > { %s83_s27 = ssub.s32 %s2631_s18, %s3542_s23  ;;  %s88_s28 = sadd.s32 1, %s2615_s14 }
  0x11   : > { %s85_s29 = sor.u32 %s84_s24, %s83_s27  ;;  %p163_p10 = pnand %p2082_p7, %p162_p9 }
  0x12   : > { %p86_p11 = scmp.eq.s32.totalorder %s85_s29, 0  ;;  %p191_p12 = scmp.lt.s32.totalorder (!%p163_p10), %s2623_s16, 1 }
  0x13   : > { %166 = sbr.rel (%p163_p10) target bundleno = 481 (0x1e1), region = 28  ;;  %s2637_s11 = smov (!%p163_p10), 48  }
  0x14   : > { %s2734_s30 = scalar_select %p86_p11, %s2615_s14, %s88_s28  }
  0x15   : > { %s2330_s5 = smul.u32 (!%p163_p10), 96, %s2619_s15  ;;  %s2638_s20 = smov (!%p163_p10), 96  }
  0x16   : > { %s2639_s21 = smov (!%p163_p10), 32   ;;  %s2640_s24 = smov (!%p163_p10), 64  }
  0x17   : > { %s2641_s27 = smov (!%p163_p10), 16   ;;  %s2642_s28 = smov (!%p163_p10), 112  }
  0x18   : > { %s192_s4 = scalar_select %p191_p12, %s2623_s16, 1  ;;  %vm453_vm0 = vcmask 1042432   ;;  %vm454_vm1 = vcmask 1046532   ;;  %vm226_vm2 = vsmask.f32 3328  ;;  %vm1480_vm6 = vcmask 130048  }
  0x19   : > { %vm227_vm3 = vsmask.f32 7440  ;;  %vm2748_vm4 = vmor %vm453_vm0, %vm454_vm1  ;;  %s2643_s29 = smov 80   ;;  %vm1505_vm7 = vcmask 261120   ;;  %vm1522_vm8 = vcmask 392192   ;;  %vm1539_vm9 = vcmask 523264  }
  0x1a   : > { %s2420_s6 = smul.u32 216, %s192_s4  ;;  %vm2775_vm5 = vmor %vm226_vm2, %vm227_vm3  ;;  %vm1556_vm10 = vcmask 654336   ;;  %vm1573_vm11 = vcmask 785408   ;;  %vm1590_vm12 = vcmask 916480  }
  0x1c   : > { %s195_s9 = scalar_lea.vmem %s3520_s0, %s2420_s6 }
  0x1d   : > { %s2742_s10 = scalar_lea.vmem %s195_s9, %s2330_s5 }
  0x1e   : > { %v2339_v0 = vld [vmem:[%s2742_s10 + $0xc] sm:$0xff]  ;;  %v203_v1 = vld [vmem:[%s2742_s10 + $0x4] sm:$0xf]  ;;  %v218_v2 = vld [vmem:[%s2742_s10 + $0x8] sm:$0x1] }
  0x1f   : > { %v249_v3 = vshll.u32 %v218_v2, 16  ;;  %v421_v4 = vld [vmem:[%s2742_s10] sm:$0xe]  ;;  %v458_v6 = vrot.slane %v203_v1, 5  ;;  %v461_v7 = vrot.slane %v218_v2, 5  ;;  %v243_v8 = vshrl.u32 %v203_v1, 16  ;;  %1272 = vrot.lane.b32.xlu1 %v2339_v0, %s2637_s11 }
  0x20   : > { %v2089_v9 = vrot.slane %v421_v4, 9  ;;  %v2099_v10 = vld [vmem:[%s2742_s10 + $0xc] sm:$0xf]  ;;  %v2755_v11 = vld [vmem:[%s2742_s10 + $0x10] sm:$0xf]  ;;  %v239_v12 = vshll.u32 %v203_v1, 16 }
  0x21   : > { %v460_v13 = vrot.slane %v458_v6, 4  ;;  %v2758_v14 = vld [vmem:[%s2742_s10 + $0x14] sm:$0x1]  ;;  %v541_v15 = vshrl.u32 %v2099_v10, 16  ;;  %v544_v16 = vshll.u32 %v2099_v10, 16  ;;  %v550_v17 = vshll.u32 %v2755_v11, 16 }
  0x22   : > { %v459_v18 = vsel %vm2748_vm4, %v2089_v9, %v458_v6  ;;  %v554_v19 = vshrl.u32 %v2755_v11, 16  ;;  %v560_v20 = vshll.u32 %v2758_v14, 16  ;;  %v202_v21 = vld [vmem:[%s2742_s10] sm:$0xf]  ;;  %v241_v22 = vrot.slane %v239_v12, 5  ;;  %v2347_v32 = vld [vmem:[%s2742_s10 + $0x18] sm:$0xff] }
  0x23   : > { %v462_v23 = vsel %vm2748_vm4, %v460_v13, %v461_v7  ;;  %v1200_v24 = vunpack.c.l.b16 %v459_v18  ;;  %v543_v25 = vrot.slane %v541_v15, 4  ;;  %v546_v26 = vrot.slane %v544_v16, 5  ;;  %v210_v27 = vld [vmem:[%s2742_s10 + $0x30] sm:$0xf]  ;;  %v2771_v37 = vld [vmem:[%s2742_s10 + $0x34] sm:$0xf]  ;;  %1400 = vrot.lane.b32.xlu2 %v2347_v32, %s2638_s20 }
  0x24   : > { %v1201_v28 = vunpack.c.l.b16 %v462_v23  ;;  %v552_v29 = vrot.slane %v550_v17, 5  ;;  %v556_v30 = vrot.slane %v554_v19, 4  ;;  %v562_v31 = vrot.slane %v560_v20, 5  ;;  %v2785_v54 = vld [vmem:[%s2742_s10 + $0x38] sm:$0x1] }
  0x25   : > { %v547_v33 = vor.u32 %v546_v26, %v543_v25  ;;  %v230_v34 = vshrl.u32 %v202_v21, 16  ;;  %v233_v35 = vshll.u32 %v202_v21, 16  ;;  %v245_v36 = vrot.slane %v243_v8, 4  ;;  %v2141_v56 = vld [vmem:[%s2742_s10 + $0x18] sm:$0xf] }
  0x26   : > { %v1216_v38 = vpack.c.b16 %v1201_v28, %v1200_v24  ;;  %v557_v40 = vor.u32 %v556_v30, %v552_v29  ;;  %v251_v41 = vrot.slane %v249_v3, 5  ;;  %v326_v42 = vshrl.u32 %v210_v27, 16  ;;  %v2795_v4 = vld [vmem:[%s2742_s10 + $0x1c] sm:$0xf]  ;;  %v2800_v10 = vld [vmem:[%s2742_s10 + $0x20] sm:$0x1] }
  0x27   : > { %v548_v43 = vrot.slane %v547_v33, 4  ;;  %v232_v44 = vrot.slane %v230_v34, 4  ;;  %v235_v45 = vrot.slane %v233_v35, 5  ;;  %v246_v46 = vor.u32 %v245_v36, %v241_v22  ;;  %v2107_v13 = vld [vmem:[%s2742_s10 + $0x3c] sm:$0xf] }
  0x28   : > { %1224 = vrot.lane.b32.xlu0 %v1216_v38, %s2639_s21  ;;  %v558_v47 = vrot.slane %v557_v40, 4  ;;  %v328_v48 = vrot.slane %v326_v42, 4  ;;  %v329_v49 = vshll.u32 %v210_v27, 16  ;;  %v335_v50 = vshll.u32 %v2771_v37, 16  ;;  %v2810_v26 = vld [vmem:[%s2742_s10 + $0x40] sm:$0xf] }
  0x29   : > { %v553_v51 = vsel %vm2775_vm5, %v548_v43, %v552_v29  ;;  %v236_v52 = vor.u32 %v235_v45, %v232_v44  ;;  %v247_v53 = vrot.slane %v246_v46, 4  ;;  %v339_v55 = vshrl.u32 %v2771_v37, 16  ;;  %v2815_v32 = vld [vmem:[%s2742_s10 + $0x44] sm:$0x1]  ;;  %v204_v33 = vld [vmem:[%s2742_s10 + $0xc] sm:$0xf] }
  0x2a   : > { %v563_v57 = vsel %vm2775_vm5, %v558_v47, %v562_v31  ;;  %v1288_v58 = vunpack.c.l.b16 %v553_v51  ;;  %v331_v59 = vrot.slane %v329_v49, 5  ;;  %v337_v60 = vrot.slane %v335_v50, 5  ;;  %v205_v47 = vld [vmem:[%s2742_s10 + $0x10] sm:$0xf] }
  0x2b   : > { %v1289_v61 = vunpack.c.l.b16 %v563_v57  ;;  %v237_v62 = vrot.slane %v236_v52, 4  ;;  %v252_v63 = vsel %vm2775_vm5, %v247_v53, %v251_v41  ;;  %v341_v0 = vrot.slane %v339_v55, 4  ;;  %v2123_v55 = vld [vmem:[%s2742_s10 + $0xc] sm:$0xe] }
  0x2c   : > { %v1161_v1 = vunpack.c.l.b16 %v252_v63  ;;  %v332_v2 = vor.u32 %v331_v59, %v328_v48  ;;  %v345_v3 = vshll.u32 %v2785_v54, 16  ;;  %v849_v6 = vshrl.u32 %v2141_v56, 16  ;;  %v2824_v48 = vld [vmem:[%s2742_s10 + $0x14] sm:$0x1] }
  0x2d   : > { %v1304_v7 = vpack.c.b16 %v1289_v61, %v1288_v58  ;;  %v242_v8 = vsel %vm2775_vm5, %v237_v62, %v241_v22  ;;  %v342_v9 = vor.u32 %v341_v0, %v337_v60  ;;  %v852_v12 = vshll.u32 %v2141_v56, 16 }
  0x2e   : > { %v1160_v15 = vunpack.c.l.b16 %v242_v8  ;;  %v333_v16 = vrot.slane %v332_v2, 4  ;;  %v347_v17 = vrot.slane %v345_v3, 5  ;;  %v851_v18 = vrot.slane %v849_v6, 4 }
  0x2f   : > { %1312 = vrot.lane.b32.xlu1 %v1304_v7, %s2640_s24  ;;  %v343_v19 = vrot.slane %v342_v9, 4  ;;  %v854_v20 = vrot.slane %v852_v12, 5  ;;  %v858_v21 = vshll.u32 %v2795_v4, 16  ;;  %v862_v22 = vshrl.u32 %v2795_v4, 16 }
  0x30   : > { %v1176_v23 = vpack.c.b16 %v1161_v1, %v1160_v15  ;;  %v338_v24 = vsel %vm2775_vm5, %v333_v16, %v337_v60  ;;  %v868_v25 = vshll.u32 %v2800_v10, 16  ;;  %v637_v27 = vshrl.u32 %v2107_v13, 16 }
  0x31   : > { %v348_v28 = vsel %vm2775_vm5, %v343_v19, %v347_v17  ;;  %v1168_v29 = vunpack.c.l.b16 %v338_v24  ;;  %v855_v30 = vor.u32 %v854_v20, %v851_v18  ;;  %v860_v31 = vrot.slane %v858_v21, 5  ;;  %v422_v21 = vld [vmem:[%s2742_s10 + $0xc] sm:$0xe] }
  0x32   : > { %1184 = vrot.lane.b32.xlu0 %v1176_v23, %s2641_s27  ;;  %v1169_v34 = vunpack.c.l.b16 %v348_v28  ;;  %v864_v35 = vrot.slane %v862_v22, 4  ;;  %v870_v36 = vrot.slane %v868_v25, 5  ;;  %v639_v38 = vrot.slane %v637_v27, 4  ;;  %v425_v27 = vld [vmem:[%s2742_s10 + $0x30] sm:$0xe] }
  0x33   : > { %v856_v40 = vrot.slane %v855_v30, 4  ;;  %v640_v41 = vshll.u32 %v2107_v13, 16  ;;  %v646_v42 = vshll.u32 %v2810_v26, 16  ;;  %v650_v43 = vshrl.u32 %v2810_v26, 16 }
  0x34   : > { %v1180_v44 = vpack.c.b16 %v1169_v34, %v1168_v29  ;;  %v865_v45 = vor.u32 %v864_v35, %v860_v31  ;;  %v656_v46 = vshll.u32 %v2815_v32, 16  ;;  %v254_v49 = vshrl.u32 %v204_v33, 16 }
  0x35   : > { %v861_v50 = vsel %vm2775_vm5, %v856_v40, %v860_v31  ;;  %v642_v51 = vrot.slane %v640_v41, 5  ;;  %v648_v52 = vrot.slane %v646_v42, 5  ;;  %v652_v53 = vrot.slane %v650_v43, 4  ;;  %v2850_v42 = vld [vmem:[%s2742_s10 + $0x1c] sm:$0xf] }
  0x36   : > { %v866_v56 = vrot.slane %v865_v45, 4  ;;  %v1416_v57 = vunpack.c.l.b16 %v861_v50  ;;  %v658_v58 = vrot.slane %v656_v46, 5  ;;  %v256_v59 = vrot.slane %v254_v49, 4  ;;  %v2124_v43 = vld [vmem:[%s2742_s10 + $0x18] sm:$0xe] }
  0x37   : > { %1192 = vrot.lane.b32.xlu1 %v1180_v44, %s2641_s27  ;;  %v643_v60 = vor.u32 %v642_v51, %v639_v38  ;;  %v653_v61 = vor.u32 %v652_v53, %v648_v52  ;;  %v257_v62 = vshll.u32 %v204_v33, 16  ;;  %v263_v63 = vshll.u32 %v205_v47, 16 }
  0x38   : > { %v871_v0 = vsel %vm2775_vm5, %v866_v56, %v870_v36  ;;  %v267_v1 = vshrl.u32 %v205_v47, 16  ;;  %v273_v2 = vshll.u32 %v2824_v48, 16  ;;  %v2131_v3 = vrot.slane %v2123_v55, 9 }
  0x39   : > { %v1417_v6 = vunpack.c.l.b16 %v871_v0  ;;  %v644_v7 = vrot.slane %v643_v60, 4  ;;  %v654_v8 = vrot.slane %v653_v61, 4  ;;  %v259_v9 = vrot.slane %v257_v62, 5 }
  0x3a   : > { %v265_v12 = vrot.slane %v263_v63, 5  ;;  %v269_v13 = vrot.slane %v267_v1, 4  ;;  %v275_v15 = vrot.slane %v273_v2, 5  ;;  %v766_v16 = vrot.slane %v2755_v11, 5  ;;  %v223_v2 = vld [vmem:[%s2742_s10 + $0x44] sm:$0x1] }
  0x3b   : > { %v1432_v17 = vpack.c.b16 %v1417_v6, %v1416_v57  ;;  %v649_v18 = vsel %vm2775_vm5, %v644_v7, %v648_v52  ;;  %v659_v19 = vsel %vm2775_vm5, %v654_v8, %v658_v58  ;;  %v260_v20 = vor.u32 %v259_v9, %v256_v59  ;;  %v2861_v52 = vld [vmem:[%s2742_s10 + $0x20] sm:$0x1]  ;;  %v2127_v58 = vld [vmem:[%s2742_s10 + $0x3c] sm:$0xe] }
  0x3c   : > { %v1296_v22 = vunpack.c.l.b16 %v649_v18  ;;  %v1297_v23 = vunpack.c.l.b16 %v659_v19  ;;  %v270_v24 = vor.u32 %v269_v13, %v265_v12  ;;  %v767_v25 = vsel %vm2748_vm4, %v2131_v3, %v766_v16  ;;  %v426_v3 = vld [vmem:[%s2742_s10 + $0x3c] sm:$0xe] }
  0x3d   : > { %1440 = vrot.lane.b32.xlu0 %v1432_v17, %s2642_s28  ;;  %v261_v11 = vrot.slane %v260_v20, 4  ;;  %v768_v28 = vrot.slane %v766_v16, 4  ;;  %v769_v29 = vrot.slane %v2758_v14, 5  ;;  %v1328_v30 = vunpack.c.l.b16 %v767_v25  ;;  %v212_v17 = vld [vmem:[%s2742_s10 + $0x3c] sm:$0xf] }
  0x3e   : > { %v1308_v31 = vpack.c.b16 %v1297_v23, %v1296_v22  ;;  %v271_v33 = vrot.slane %v270_v24, 4  ;;  %v2090_v34 = vrot.slane %v422_v21, 9  ;;  %v465_v35 = vrot.slane %v205_v47, 5  ;;  %v2343_v47 = vld [vmem:[%s2742_s10 + $0x3c] sm:$0xff] }
  0x3f   : > { %v266_v36 = vsel %vm2775_vm5, %v261_v11, %v265_v12  ;;  %v770_v38 = vsel %vm2748_vm4, %v768_v28, %v769_v29  ;;  %v468_v40 = vrot.slane %v2824_v48, 5  ;;  %v2093_v41 = vrot.slane %v425_v27, 9 }
  0x40   : > { %1320 = vrot.lane.b32.xlu1 %v1308_v31, %s2640_s24  ;;  %v276_v14 = vsel %vm2775_vm5, %v271_v33, %v275_v15  ;;  %v1162_v44 = vunpack.c.l.b16 %v266_v36  ;;  %v1329_v45 = vunpack.c.l.b16 %v770_v38  ;;  %v466_v46 = vsel %vm2748_vm4, %v2090_v34, %v465_v35  ;;  %v2149_v34 = vld [vmem:[%s2742_s10 + $0x48] sm:$0xf] }
  0x41   : > { %v1163_v49 = vunpack.c.l.b16 %v276_v14  ;;  %v467_v50 = vrot.slane %v465_v35, 4  ;;  %v1202_v48 = vunpack.c.l.b16 %v466_v46  ;;  %v486_v51 = vrot.slane %v2771_v37, 5  ;;  %v213_v37 = vld [vmem:[%s2742_s10 + $0x40] sm:$0xf] }
  0x42   : > { %v1344_v53 = vpack.c.b16 %v1329_v45, %v1328_v30  ;;  %v489_v55 = vrot.slane %v2785_v54, 5  ;;  %v2132_v56 = vrot.slane %v2124_v43, 9  ;;  %v773_v57 = vrot.slane %v2850_v42, 5  ;;  %v2340_v43 = vld [vmem:[%s2742_s10 + $0x18] sm:$0xff] }
  0x43   : > { %v1177_v59 = vpack.c.b16 %v1163_v49, %v1162_v44  ;;  %v469_v60 = vsel %vm2748_vm4, %v467_v50, %v468_v40  ;;  %v487_v61 = vsel %vm2748_vm4, %v2093_v41, %v486_v51  ;;  %v488_v62 = vrot.slane %v486_v51, 4  ;;  %v2150_v41 = vld [vmem:[%s2742_s10 + $0x4c] sm:$0xf] }
  0x44   : > { %1352 = vrot.lane.b32.xlu2 %v1344_v53, %s2643_s29  ;;  %v1203_v63 = vunpack.c.l.b16 %v469_v60  ;;  %v1208_v54 = vunpack.c.l.b16 %v487_v61  ;;  %v774_v0 = vsel %vm2748_vm4, %v2132_v56, %v773_v57  ;;  %v775_v1 = vrot.slane %v773_v57, 4  ;;  %v2128_v53 = vld [vmem:[%s2742_s10 + $0x48] sm:$0xe] }
  0x45   : > { %1280 = vrot.lane.b32.xlu0 %v2343_v47, %s2637_s11  ;;  %v490_v6 = vsel %vm2748_vm4, %v488_v62, %v489_v55  ;;  %v776_v7 = vrot.slane %v2861_v52, 5  ;;  %v1330_v8 = vunpack.c.l.b16 %v774_v0  ;;  %v2135_v9 = vrot.slane %v2127_v58, 9  ;;  %v2161_v47 = vld [vmem:[%s2742_s10 + $0x50] sm:$0x1] }
  0x46   : > { %v2880_v12 = vpack.c.b16 %v1203_v63, %v1202_v48  ;;  %v1209_v13 = vunpack.c.l.b16 %v490_v6  ;;  %v794_v15 = vrot.slane %v2810_v26, 5  ;;  %v797_v16 = vrot.slane %v2815_v32, 5  ;;  %v2351_v26 = vld [vmem:[%s2742_s10 + $0x48] sm:$0xff]  ;;  %v2120_v63 = vld [vmem:[%s2742_s10 + $0x50] sm:$0x1] }
  0x47   : > { %v777_v18 = vsel %vm2748_vm4, %v775_v1, %v776_v7  ;;  %v2094_v19 = vrot.slane %v426_v3, 9  ;;  %v493_v20 = vrot.slane %v213_v37, 5  ;;  %v496_v21 = vrot.slane %v223_v2, 5 }
  0x48   : > { %1186 = vrot.lane.b32.xlu1 %v1177_v59, %s2641_s27  ;;  %v1220_v22 = vpack.c.b16 %v1209_v13, %v1208_v54  ;;  %v1331_v23 = vunpack.c.l.b16 %v777_v18  ;;  %v795_v24 = vsel %vm2748_vm4, %v2135_v9, %v794_v15  ;;  %v796_v25 = vrot.slane %v794_v15, 4  ;;  %v2110_v59 = vld [vmem:[%s2742_s10 + $0x4c] sm:$0xf]  ;;  %v2109_v9 = vld [vmem:[%s2742_s10 + $0x48] sm:$0xf] }
  0x49   : > { %v1336_v32 = vunpack.c.l.b16 %v795_v24  ;;  %v494_v27 = vsel %vm2748_vm4, %v2094_v19, %v493_v20  ;;  %v495_v11 = vrot.slane %v493_v20, 4  ;;  %v350_v28 = vshrl.u32 %v212_v17, 16 }
  0x4a   : > { %v2893_v29 = vpack.c.b16 %v1331_v23, %v1330_v8  ;;  %v798_v30 = vsel %vm2748_vm4, %v796_v25, %v797_v16  ;;  %v1210_v31 = vunpack.c.l.b16 %v494_v27  ;;  %v353_v33 = vshll.u32 %v212_v17, 16 }
  0x4b   : > { %v1337_v35 = vunpack.c.l.b16 %v798_v30  ;;  %v497_v36 = vsel %vm2748_vm4, %v495_v11, %v496_v21  ;;  %v352_v38 = vrot.slane %v350_v28, 4  ;;  %v359_v40 = vshll.u32 %v213_v37, 16 }
  0x4c   : > { %1232 = vrot.lane.b32.xlu2 %v1220_v22, %s2639_s21  ;;  %v1211_v14 = vunpack.c.l.b16 %v497_v36  ;;  %v355_v44 = vrot.slane %v353_v33, 5  ;;  %v363_v45 = vshrl.u32 %v213_v37, 16  ;;  %v369_v46 = vshll.u32 %v223_v2, 16  ;;  %v2348_v22 = vld [vmem:[%s2742_s10 + $0x24] sm:$0xff] }
  0x4d   : > { %1408 = vrot.lane.b32.xlu0 %v2351_v26, %s2638_s20  ;;  %v1348_v49 = vpack.c.b16 %v1337_v35, %v1336_v32  ;;  %v361_v50 = vrot.slane %v359_v40, 5  ;;  %v945_v48 = vshrl.u32 %v2149_v34, 16  ;;  %v948_v51 = vshll.u32 %v2149_v34, 16  ;;  %v2101_v35 = vld [vmem:[%s2742_s10 + $0x18] sm:$0xf] }
  0x4e   : > { %v2906_v55 = vpack.c.b16 %v1211_v14, %v1210_v31  ;;  %v356_v56 = vor.u32 %v355_v44, %v352_v38  ;;  %v365_v57 = vrot.slane %v363_v45, 4  ;;  %v371_v58 = vrot.slane %v369_v46, 5 }
  0x4f   : > { %v947_v60 = vrot.slane %v945_v48, 4  ;;  %v950_v61 = vrot.slane %v948_v51, 5  ;;  %v954_v62 = vshll.u32 %v2150_v41, 16  ;;  %v958_v37 = vshrl.u32 %v2150_v41, 16 }
  0x50   : > { %1274 = vrot.lane.b32.xlu1 %v2340_v43, %s2637_s11  ;;  %v357_v54 = vrot.slane %v356_v56, 4  ;;  %v366_v0 = vor.u32 %v365_v57, %v361_v50  ;;  %v964_v1 = vshll.u32 %v2161_v47, 16  ;;  %v2136_v2 = vrot.slane %v2128_v53, 9 }
  0x51   : > { %v951_v3 = vor.u32 %v950_v61, %v947_v60  ;;  %v956_v6 = vrot.slane %v954_v62, 5  ;;  %v960_v7 = vrot.slane %v958_v37, 4  ;;  %v801_v8 = vrot.slane %v2110_v59, 5 }
  0x52   : > { %v362_v13 = vsel %vm2775_vm5, %v357_v54, %v361_v50  ;;  %v367_v15 = vrot.slane %v366_v0, 4  ;;  %v966_v16 = vrot.slane %v964_v1, 5  ;;  %v804_v17 = vrot.slane %v2120_v63, 5  ;;  %v2151_v50 = vld [vmem:[%s2742_s10 + $0x54] sm:$0xf] }
  0x53   : > { %v2914_v18 = vunpack.c.l.b16 %v362_v13  ;;  %v952_v19 = vrot.slane %v951_v3, 4  ;;  %v961_v20 = vor.u32 %v960_v7, %v956_v6  ;;  %v802_v21 = vsel %vm2748_vm4, %v2136_v2, %v801_v8  ;;  %v2162_v3 = vld [vmem:[%s2742_s10 + $0x5c] sm:$0x1]  ;;  %v206_v7 = vld [vmem:[%s2742_s10 + $0x18] sm:$0xf] }
  0x54   : > { %1360 = vrot.lane.b32.xlu2 %v1348_v49, %s2643_s29  ;;  %v372_v23 = vsel %vm2775_vm5, %v367_v15, %v371_v58  ;;  %v803_v24 = vrot.slane %v801_v8, 4  ;;  %v1338_v25 = vunpack.c.l.b16 %v802_v21  ;;  %v661_v26 = vshrl.u32 %v2109_v9, 16 }
  0x55   : > { %1226 = vrot.lane.b32.xlu0 %v2880_v12, %s2639_s21  ;;  %v2924_v32 = vunpack.c.l.b16 %v372_v23  ;;  %v957_v27 = vsel %vm2775_vm5, %v952_v19, %v956_v6  ;;  %v962_v11 = vrot.slane %v961_v20, 4  ;;  %v664_v28 = vshll.u32 %v2109_v9, 16 }
  0x56   : > { %v1424_v30 = vunpack.c.l.b16 %v957_v27  ;;  %v805_v31 = vsel %vm2748_vm4, %v803_v24, %v804_v17  ;;  %v663_v33 = vrot.slane %v661_v26, 4  ;;  %v670_v34 = vshll.u32 %v2110_v59, 16  ;;  %v2962_v27 = vld [vmem:[%s2742_s10 + $0x1c] sm:$0xf] }
  0x57   : > { %v1181_v36 = vpack.c.b16 %v2924_v32, %v2914_v18  ;;  %v967_v12 = vsel %vm2775_vm5, %v962_v11, %v966_v16  ;;  %v1339_v38 = vunpack.c.l.b16 %v805_v31  ;;  %v666_v40 = vrot.slane %v664_v28, 5  ;;  %v2143_v11 = vld [vmem:[%s2742_s10 + $0x24] sm:$0xf] }
  0x58   : > { %1402 = vrot.lane.b32.xlu1 %v2348_v22, %s2638_s20  ;;  %v1425_v41 = vunpack.c.l.b16 %v967_v12  ;;  %v672_v43 = vrot.slane %v670_v34, 5  ;;  %v674_v14 = vshrl.u32 %v2110_v59, 16  ;;  %v680_v44 = vshll.u32 %v2120_v63, 16  ;;  %v2152_v63 = vld [vmem:[%s2742_s10 + $0x58] sm:$0xf] }
  0x59   : > { %v2936_v45 = vpack.c.b16 %v1339_v38, %v1338_v25  ;;  %v667_v46 = vor.u32 %v666_v40, %v663_v33  ;;  %v565_v47 = vshrl.u32 %v2101_v35, 16  ;;  %v568_v49 = vshll.u32 %v2101_v35, 16  ;;  %v2966_v33 = vld [vmem:[%s2742_s10 + $0x20] sm:$0x1] }
  0x5a   : > { %v1436_v48 = vpack.c.b16 %v1425_v41, %v1424_v30  ;;  %v676_v51 = vrot.slane %v674_v14, 4  ;;  %v682_v53 = vrot.slane %v680_v44, 5  ;;  %v574_v56 = vshll.u32 %v2850_v42, 16 }
  0x5b   : > { %v668_v57 = vrot.slane %v667_v46, 4  ;;  %v567_v58 = vrot.slane %v565_v47, 4  ;;  %v570_v60 = vrot.slane %v568_v49, 5  ;;  %v578_v59 = vshrl.u32 %v2850_v42, 16  ;;  %v2981_v49 = vld [vmem:[%s2742_s10 + $0x28] sm:$0xf] }
  0x5c   : > { %1448 = vrot.lane.b32.xlu2 %v1436_v48, %s2642_s28  ;;  %v677_v61 = vor.u32 %v676_v51, %v672_v43  ;;  %v576_v62 = vrot.slane %v574_v56, 5  ;;  %v584_v37 = vshll.u32 %v2861_v52, 16  ;;  %v969_v54 = vshrl.u32 %v2151_v50, 16  ;;  %v2363_v52 = vld [vmem:[%s3521_s1 + $0x40] sm:$0xff] }
  0x5d   : > { %1354 = vrot.lane.b32.xlu0 %v2893_v29, %s2643_s29  ;;  %v673_v0 = vsel %vm2775_vm5, %v668_v57, %v672_v43  ;;  %v571_v1 = vor.u32 %v570_v60, %v567_v58  ;;  %v580_v2 = vrot.slane %v578_v59, 4  ;;  %v972_v6 = vshll.u32 %v2151_v50, 16  ;;  %1767 = vmatpush.bf16.msra.mxu1 %v2363_v52  ;;  %v2984_v57 = vld [vmem:[%s2742_s10 + $0x2c] sm:$0x1]  ;;  %v2103_v60 = vld [vmem:[%s2742_s10 + $0x24] sm:$0xf] }
  0x5e   : > { %v678_v42 = vrot.slane %v677_v61, 4  ;;  %v2950_v8 = vunpack.c.l.b16 %v673_v0  ;;  %v586_v9 = vrot.slane %v584_v37, 5  ;;  %v971_v13 = vrot.slane %v969_v54, 4  ;;  %2419 = vmatpush.bf16.msra.mxu3 %v2363_v52 }
  0x5f   : > { %v572_v29 = vrot.slane %v571_v1, 4  ;;  %v581_v15 = vor.u32 %v580_v2, %v576_v62  ;;  %v974_v16 = vrot.slane %v972_v6, 5  ;;  %v978_v17 = vshll.u32 %v2152_v63, 16  ;;  %v2996_v6 = vld [vmem:[%s2742_s10 + $0x28] sm:$0xf] }
  0x60   : > { %1234 = vrot.lane.b32.xlu1 %v2906_v55, %s2639_s21  ;;  %v683_v19 = vsel %vm2775_vm5, %v678_v42, %v682_v53  ;;  %v982_v20 = vshrl.u32 %v2152_v63, 16  ;;  %v988_v21 = vshll.u32 %v2162_v3, 16  ;;  %v278_v22 = vshrl.u32 %v206_v7, 16 }
  0x61   : > { %v1299_v23 = vunpack.c.l.b16 %v683_v19  ;;  %v577_v24 = vsel %vm2775_vm5, %v572_v29, %v576_v62  ;;  %v582_v25 = vrot.slane %v581_v15, 4  ;;  %v975_v26 = vor.u32 %v974_v16, %v971_v13  ;;  %v3001_v15 = vld [vmem:[%s2742_s10 + $0x2c] sm:$0x1]  ;;  %v2145_v19 = vld [vmem:[%s2742_s10 + $0x30] sm:$0xf] }
  0x62   : > { %v1290_v28 = vunpack.c.l.b16 %v577_v24  ;;  %v980_v55 = vrot.slane %v978_v17, 5  ;;  %v984_v30 = vrot.slane %v982_v20, 4  ;;  %v990_v31 = vrot.slane %v988_v21, 5 }
  0x63   : > { %v1309_v34 = vpack.c.b16 %v1299_v23, %v2950_v8  ;;  %v587_v35 = vsel %vm2775_vm5, %v582_v25, %v586_v9  ;;  %v976_v12 = vrot.slane %v975_v26, 4  ;;  %v280_v38 = vrot.slane %v278_v22, 4 }
  0x64   : > { %v1291_v40 = vunpack.c.l.b16 %v587_v35  ;;  %v985_v41 = vor.u32 %v984_v30, %v980_v55  ;;  %v281_v43 = vshll.u32 %v206_v7, 16  ;;  %v287_v14 = vshll.u32 %v2962_v27, 16 }
  0x65   : > { %1194 = vrot.lane.b32.xlu0 %v1181_v36, %s2641_s27  ;;  %v981_v44 = vsel %vm2775_vm5, %v976_v12, %v980_v55  ;;  %v291_v46 = vshrl.u32 %v2962_v27, 16  ;;  %v297_v47 = vshll.u32 %v2966_v33, 16  ;;  %v873_v50 = vshrl.u32 %v2143_v11, 16 }
  0x66   : > { %v1305_v48 = vpack.c.b16 %v1291_v40, %v1290_v28  ;;  %v986_v51 = vrot.slane %v985_v41, 4  ;;  %v1426_v53 = vunpack.c.l.b16 %v981_v44  ;;  %v283_v56 = vrot.slane %v281_v43, 5  ;;  %v2362_v28 = vld [vmem:[%s3521_s1 + $0x38] sm:$0xff] }
  0x67   : > { %v289_v58 = vrot.slane %v287_v14, 5  ;;  %v293_v18 = vrot.slane %v291_v46, 4  ;;  %v299_v32 = vrot.slane %v297_v47, 5  ;;  %v875_v36 = vrot.slane %v873_v50, 4  ;;  %v3020_v43 = vld [vmem:[%s2742_s10 + $0x38] sm:$0x1]  ;;  %1711 = vmatpush.bf16.msra.mxu0 %v2362_v28  ;;  %2411 = vmatpush.bf16.msra.mxu2 %v2362_v28 }
  0x68   : > { %1362 = vrot.lane.b32.xlu1 %v2936_v45, %s2643_s29  ;;  %1314 = vrot.lane.b32.xlu2 %v1305_v48, %s2640_s24  ;;  %v991_v59 = vsel %vm2775_vm5, %v986_v51, %v990_v31  ;;  %v284_v61 = vor.u32 %v283_v56, %v280_v38  ;;  %v876_v62 = vshll.u32 %v2143_v11, 16  ;;  %v882_v37 = vshll.u32 %v2981_v49, 16  ;;  %v2165_v14 = vld [vmem:[%s2742_s10 + $0x18] sm:$0xe] }
  0x69   : > { %v1427_v63 = vunpack.c.l.b16 %v991_v59  ;;  %v294_v54 = vor.u32 %v293_v18, %v289_v58  ;;  %v886_v0 = vshrl.u32 %v2981_v49, 16  ;;  %v892_v1 = vshll.u32 %v2984_v57, 16 }
  0x6a   : > { %v285_v2 = vrot.slane %v284_v61, 4  ;;  %v878_v3 = vrot.slane %v876_v62, 5  ;;  %v884_v45 = vrot.slane %v882_v37, 5  ;;  %v589_v7 = vshrl.u32 %v2103_v60, 16  ;;  %v427_v37 = vld [vmem:[%s2742_s10 + $0x48] sm:$0xe] }
  0x6b   : > { %v1437_v42 = vpack.c.b16 %v1427_v63, %v1426_v53  ;;  %v295_v8 = vrot.slane %v294_v54, 4  ;;  %v888_v9 = vrot.slane %v886_v0, 4  ;;  %v894_v13 = vrot.slane %v892_v1, 5  ;;  %v2361_v63 = vld [vmem:[%s3521_s1 + $0x30] sm:$0xff] }
  0x6c   : > { %v290_v52 = vsel %vm2775_vm5, %v285_v2, %v289_v58  ;;  %v879_v29 = vor.u32 %v878_v3, %v875_v36  ;;  %v591_v16 = vrot.slane %v589_v7, 4  ;;  %v592_v17 = vshll.u32 %v2103_v60, 16  ;;  %v3036_v2 = vld [vmem:[%s2742_s10 + $0x4c] sm:$0xf]  ;;  %1712 = vmatpush.bf16.msra.mxu0 %v2361_v63  ;;  %2412 = vmatpush.bf16.msra.mxu2 %v2361_v63 }
  0x6d   : > { %1322 = vrot.lane.b32.xlu0 %v1309_v34, %s2640_s24  ;;  %v300_v20 = vsel %vm2775_vm5, %v295_v8, %v299_v32  ;;  %v1164_v21 = vunpack.c.l.b16 %v290_v52  ;;  %v889_v22 = vor.u32 %v888_v9, %v884_v45  ;;  %v598_v23 = vshll.u32 %v2996_v6, 16  ;;  %v3014_v34 = vld [vmem:[%s2742_s10 + $0x34] sm:$0xf]  ;;  %v3044_v8 = vld [vmem:[%s2742_s10 + $0x50] sm:$0x1]  ;;  %v2360_v9 = vld [vmem:[%s3521_s1 + $0x28] sm:$0xff] }
  0x6e   : > { %v1165_v24 = vunpack.c.l.b16 %v300_v20  ;;  %v880_v25 = vrot.slane %v879_v29, 4  ;;  %v594_v26 = vrot.slane %v592_v17, 5  ;;  %v602_v11 = vshrl.u32 %v2996_v6, 16 }
  0x6f   : > { %v890_v55 = vrot.slane %v889_v22, 4  ;;  %v600_v30 = vrot.slane %v598_v23, 5  ;;  %v608_v31 = vshll.u32 %v3001_v15, 16  ;;  %v897_v35 = vshrl.u32 %v2145_v19, 16 }
  0x70   : > { %1450 = vrot.lane.b32.xlu1 %v1437_v42, %s2642_s28  ;;  %v1178_v12 = vpack.c.b16 %v1165_v24, %v1164_v21  ;;  %v885_v38 = vsel %vm2775_vm5, %v880_v25, %v884_v45  ;;  %v595_v40 = vor.u32 %v594_v26, %v591_v16  ;;  %v604_v41 = vrot.slane %v602_v11, 4  ;;  %v2341_v21 = vld [vmem:[%s2742_s10 + $0x24] sm:$0xff]  ;;  %v423_v25 = vld [vmem:[%s2742_s10 + $0x18] sm:$0xe]  ;;  %1713 = vmatpush.bf16.msra.mxu0 %v2360_v9 }
  0x71   : > { %v895_v44 = vsel %vm2775_vm5, %v890_v55, %v894_v13  ;;  %v1418_v46 = vunpack.c.l.b16 %v885_v38  ;;  %v610_v47 = vrot.slane %v608_v31, 5  ;;  %v899_v50 = vrot.slane %v897_v35, 4  ;;  %v2344_v26 = vld [vmem:[%s2742_s10 + $0x48] sm:$0xff]  ;;  %v2129_v31 = vld [vmem:[%s2742_s10 + $0x54] sm:$0xe]  ;;  %2413 = vmatpush.bf16.msra.mxu2 %v2360_v9 }
  0x72   : > { %v1419_v48 = vunpack.c.l.b16 %v895_v44  ;;  %v596_v51 = vrot.slane %v595_v40, 4  ;;  %v605_v53 = vor.u32 %v604_v41, %v600_v30  ;;  %v900_v56 = vshll.u32 %v2145_v19, 16  ;;  %v3067_v40 = vld [vmem:[%s2742_s10 + $0x58] sm:$0xf]  ;;  %v3070_v41 = vld [vmem:[%s2742_s10 + $0x5c] sm:$0x1] }
  0x73   : > { %v906_v58 = vshll.u32 %v3014_v34, 16  ;;  %v910_v18 = vshrl.u32 %v3014_v34, 16  ;;  %v916_v32 = vshll.u32 %v3020_v43, 16  ;;  %v2173_v36 = vrot.slane %v2165_v14, 9 }
  0x74   : > { %v1433_v60 = vpack.c.b16 %v1419_v48, %v1418_v46  ;;  %v601_v59 = vsel %vm2775_vm5, %v596_v51, %v600_v30  ;;  %v606_v61 = vrot.slane %v605_v53, 4  ;;  %v902_v62 = vrot.slane %v900_v56, 5  ;;  %v2359_v48 = vld [vmem:[%s3521_s1 + $0x20] sm:$0xff] }
  0x75   : > { %1188 = vrot.lane.b32.xlu0 %v1178_v12, %s2641_s27  ;;  %v1292_v54 = vunpack.c.l.b16 %v601_v59  ;;  %v908_v0 = vrot.slane %v906_v58, 5  ;;  %v912_v1 = vrot.slane %v910_v18, 4  ;;  %v1074_v7 = vrot.slane %v2795_v4, 5  ;;  %1714 = vmatpush.bf16.msra.mxu0 %v2359_v48  ;;  %v2358_v59 = vld [vmem:[%s3521_s1 + $0x18] sm:$0xff] }
  0x76   : > { %1442 = vrot.lane.b32.xlu2 %v1433_v60, %s2642_s28  ;;  %v611_v3 = vsel %vm2775_vm5, %v606_v61, %v610_v47  ;;  %v903_v45 = vor.u32 %v902_v62, %v899_v50  ;;  %v1077_v42 = vrot.slane %v2800_v10, 5  ;;  %v918_v29 = vrot.slane %v916_v32, 5  ;;  %v2125_v50 = vld [vmem:[%s2742_s10 + $0x24] sm:$0xe]  ;;  %2414 = vmatpush.bf16.msra.mxu2 %v2359_v48 }
  0x77   : > { %v1293_v13 = vunpack.c.l.b16 %v611_v3  ;;  %v913_v52 = vor.u32 %v912_v1, %v908_v0  ;;  %v2095_v16 = vrot.slane %v427_v37, 9  ;;  %v1075_v4 = vsel %vm2748_vm4, %v2173_v36, %v1074_v7  ;;  %v2166_v60 = vld [vmem:[%s2742_s10 + $0x24] sm:$0xe]  ;;  %v2349_v3 = vld [vmem:[%s2742_s10 + $0x30] sm:$0xff] }
  0x78   : > { %v904_v17 = vrot.slane %v903_v45, 4  ;;  %v1076_v10 = vrot.slane %v1074_v7, 4  ;;  %v500_v19 = vrot.slane %v3036_v2, 5  ;;  %v1456_v23 = vunpack.c.l.b16 %v1075_v4 }
  0x79   : > { %v1306_v20 = vpack.c.b16 %v1293_v13, %v1292_v54  ;;  %v914_v22 = vrot.slane %v913_v52, 4  ;;  %v503_v24 = vrot.slane %v3044_v8, 5  ;;  %v2091_v46 = vrot.slane %v423_v25, 9  ;;  %v424_v13 = vld [vmem:[%s2742_s10 + $0x24] sm:$0xe]  ;;  %v2352_v52 = vld [vmem:[%s2742_s10 + $0x54] sm:$0xff]  ;;  %1715 = vmatpush.bf16.msra.mxu0 %v2358_v59 }
  0x7a   : > { %v909_v11 = vsel %vm2775_vm5, %v904_v17, %v908_v0  ;;  %v1078_v28 = vsel %vm2748_vm4, %v1076_v10, %v1077_v42  ;;  %v501_v55 = vsel %vm2748_vm4, %v2095_v16, %v500_v19  ;;  %v502_v30 = vrot.slane %v500_v19, 4  ;;  %2415 = vmatpush.bf16.msra.mxu2 %v2358_v59 }
  0x7b   : > { %1316 = vrot.lane.b32.xlu1 %v1306_v20, %s2640_s24  ;;  %v919_v35 = vsel %vm2775_vm5, %v914_v22, %v918_v29  ;;  %v1420_v12 = vunpack.c.l.b16 %v909_v11  ;;  %v1457_v38 = vunpack.c.l.b16 %v1078_v28  ;;  %v472_v47 = vrot.slane %v2962_v27, 5  ;;  %v2153_v22 = vld [vmem:[%s2742_s10 + $0x60] sm:$0xf] }
  0x7c   : > { %v1421_v14 = vunpack.c.l.b16 %v919_v35  ;;  %v504_v44 = vsel %vm2748_vm4, %v502_v30, %v503_v24  ;;  %v1212_v53 = vunpack.c.l.b16 %v501_v55  ;;  %v475_v56 = vrot.slane %v2966_v33, 5  ;;  %v3126_v30 = vld [vmem:[%s2742_s10 + $0x64] sm:$0xf] }
  0x7d   : > { %1276 = vrot.lane.b32.xlu0 %v2341_v21, %s2637_s11  ;;  %v1472_v51 = vpack.c.b16 %v1457_v38, %v1456_v23  ;;  %v2137_v58 = vrot.slane %v2129_v31, 9  ;;  %v1213_v18 = vunpack.c.l.b16 %v504_v44  ;;  %v473_v32 = vsel %vm2748_vm4, %v2091_v46, %v472_v47  ;;  %v3111_v21 = vld [vmem:[%s2742_s10 + $0x2c] sm:$0x1]  ;;  %v2345_v44 = vld [vmem:[%s2742_s10 + $0x54] sm:$0xff] }
  0x7e   : > { %1282 = vrot.lane.b32.xlu2 %v2344_v26, %s2637_s11  ;;  %v474_v27 = vrot.slane %v472_v47, 4  ;;  %v808_v36 = vrot.slane %v3067_v40, 5  ;;  %v1434_v61 = vpack.c.b16 %v1421_v14, %v1420_v12  ;;  %v1204_v33 = vunpack.c.l.b16 %v473_v32  ;;  %v2357_v26 = vld [vmem:[%s3521_s1 + $0x10] sm:$0xff]  ;;  %v3133_v12 = vld [vmem:[%s2742_s10 + $0x68] sm:$0x1] }
  0x7f   : > { %2313 = vmatmul.msk.bf16.vlgmr.msra.gmra.mxu1 %vm1480_vm6, %v1472_v51  ;;  %v811_v62 = vrot.slane %v3070_v41, 5  ;;  %v2133_v37 = vrot.slane %v2125_v50, 9  ;;  %v780_v1 = vrot.slane %v2996_v6, 5  ;;  %v783_v42 = vrot.slane %v3001_v15, 5  ;;  %v3106_v6 = vld [vmem:[%s2742_s10 + $0x28] sm:$0xf]  ;;  %1716 = vmatpush.bf16.msra.mxu0 %v2357_v26 }
  0x80   : > { %v476_v63 = vsel %vm2748_vm4, %v474_v27, %v475_v56  ;;  %v809_v54 = vsel %vm2748_vm4, %v2137_v58, %v808_v36  ;;  %v810_v0 = vrot.slane %v808_v36, 4  ;;  %v2174_v9 = vrot.slane %v2166_v60, 9  ;;  %v214_v51 = vld [vmem:[%s2742_s10 + $0x48] sm:$0xf]  ;;  %2416 = vmatpush.bf16.msra.mxu2 %v2357_v26 }
  0x81   : > { %v1205_v45 = vunpack.c.l.b16 %v476_v63  ;;  %v1340_v7 = vunpack.c.l.b16 %v809_v54  ;;  %v781_v16 = vsel %vm2748_vm4, %v2133_v37, %v780_v1  ;;  %v782_v17 = vrot.slane %v780_v1, 4  ;;  %v2356_v32 = vld [vmem:[%s3521_s1 + $0x8] sm:$0xff] }
  0x82   : > { %v812_v29 = vsel %vm2748_vm4, %v810_v0, %v811_v62  ;;  %v1081_v4 = vrot.slane %v2981_v49, 5  ;;  %v1222_v10 = vpack.c.b16 %v1213_v18, %v1212_v53  ;;  %v1332_v19 = vunpack.c.l.b16 %v781_v16 }
  0x83   : > { %1444 = vrot.lane.b32.xlu1 %v1434_v61, %s2642_s28  ;;  %v1341_v15 = vunpack.c.l.b16 %v812_v29  ;;  %v1084_v20 = vrot.slane %v2984_v57, 5  ;;  %v784_v23 = vsel %vm2748_vm4, %v782_v17, %v783_v42  ;;  %v2092_v25 = vrot.slane %v424_v13, 9  ;;  %1717 = vmatpush.bf16.msra.mxu0 %v2356_v32  ;;  %v3156_v17 = vld [vmem:[%s2742_s10 + $0x34] sm:$0xf] }
  0x84   : > { %v1082_v49 = vsel %vm2748_vm4, %v2174_v9, %v1081_v4  ;;  %v1083_v24 = vrot.slane %v1081_v4, 4  ;;  %v1218_v57 = vpack.c.b16 %v1205_v45, %v1204_v33  ;;  %v1333_v28 = vunpack.c.l.b16 %v784_v23  ;;  %2417 = vmatpush.bf16.msra.mxu2 %v2356_v32  ;;  %v2355_v4 = vld [vmem:[%s3521_s1] sm:$0xff] }
  0x85   : > { %1404 = vrot.lane.b32.xlu0 %v2349_v3, %s2638_s20  ;;  %v3122_v11 = vpack.c.b16 %v1341_v15, %v1340_v7  ;;  %v479_v55 = vrot.slane %v3106_v6, 5  ;;  %v482_v35 = vrot.slane %v3111_v21, 5  ;;  %v993_v38 = vshrl.u32 %v2153_v22, 16  ;;  %v2105_v3 = vld [vmem:[%s2742_s10 + $0x30] sm:$0xf] }
  0x86   : > { %1410 = vrot.lane.b32.xlu2 %v2352_v52, %s2638_s20  ;;  %v1085_v31 = vsel %vm2748_vm4, %v1083_v24, %v1084_v20  ;;  %v996_v14 = vshll.u32 %v2153_v22, 16  ;;  %v1458_v46 = vunpack.c.l.b16 %v1082_v49  ;;  %v3139_v53 = vpack.c.b16 %v1333_v28, %v1332_v19  ;;  %v2353_v22 = vld [vmem:[%s2742_s10 + $0x60] sm:$0xff] }
  0x87   : > { %v1459_v47 = vunpack.c.l.b16 %v1085_v31  ;;  %v480_v50 = vsel %vm2748_vm4, %v2092_v25, %v479_v55  ;;  %v481_v48 = vrot.slane %v479_v55, 4  ;;  %v995_v56 = vrot.slane %v993_v38, 4  ;;  %1718 = vmatpush.bf16.msra.mxu0 %v2355_v4  ;;  %v2111_v55 = vld [vmem:[%s2742_s10 + $0x54] sm:$0xf] }
  0x88   : > { %v998_v58 = vrot.slane %v996_v14, 5  ;;  %v1002_v18 = vshll.u32 %v3126_v30, 16  ;;  %v1206_v36 = vunpack.c.l.b16 %v480_v50  ;;  %v1006_v60 = vshrl.u32 %v3126_v30, 16  ;;  %2418 = vmatpush.bf16.msra.mxu2 %v2355_v4 }
  0x89   : > { %v483_v27 = vsel %vm2748_vm4, %v481_v48, %v482_v35  ;;  %v1012_v59 = vshll.u32 %v3133_v12, 16  ;;  %v374_v37 = vshrl.u32 %v214_v51, 16  ;;  %v1473_v63 = vpack.c.b16 %v1459_v47, %v1458_v46 }
  0x8a   : > { %v1207_v61 = vunpack.c.l.b16 %v483_v27  ;;  %v999_v33 = vor.u32 %v998_v58, %v995_v56  ;;  %v1004_v62 = vrot.slane %v1002_v18, 5  ;;  %v1008_v54 = vrot.slane %v1006_v60, 4  ;;  %v3182_v27 = vpop.permute.xlu2 %1400 }
  0x8b   : > { %1284 = vrot.lane.b32.xlu1 %v2345_v44, %s2637_s11  ;;  %v377_v0 = vshll.u32 %v214_v51, 16  ;;  %v383_v1 = vshll.u32 %v3036_v2, 16  ;;  %v1014_v7 = vrot.slane %v1012_v59, 5  ;;  %v376_v42 = vrot.slane %v374_v37, 4  ;;  %v2126_v37 = vld [vmem:[%s2742_s10 + $0x30] sm:$0xe] }
  0x8c   : > { %v1000_v45 = vrot.slane %v999_v33, 4  ;;  %v387_v9 = vshrl.u32 %v3036_v2, 16  ;;  %v1009_v13 = vor.u32 %v1008_v54, %v1004_v62  ;;  %v393_v16 = vshll.u32 %v3044_v8, 16  ;;  %v3165_v2 = vld [vmem:[%s2742_s10 + $0x38] sm:$0x1] }
  0x8d   : > { %1236 = vrot.lane.b32.xlu0 %v1222_v10, %s2639_s21  ;;  %v379_v52 = vrot.slane %v377_v0, 5  ;;  %v385_v29 = vrot.slane %v383_v1, 5  ;;  %v3162_v15 = vpack.c.b16 %v1207_v61, %v1206_v36  ;;  %v613_v10 = vshrl.u32 %v2105_v3, 16 }
  0x8e   : > { %1228 = vrot.lane.b32.xlu2 %v1218_v57, %s2639_s21  ;;  %v389_v19 = vrot.slane %v387_v9, 4  ;;  %v616_v20 = vshll.u32 %v2105_v3, 16  ;;  %v1005_v8 = vsel %vm2775_vm5, %v1000_v45, %v1004_v62  ;;  %v1010_v23 = vrot.slane %v1009_v13, 4  ;;  %v2167_v9 = vld [vmem:[%s2742_s10 + $0x30] sm:$0xe] }
  0x8f   : > { %2314 = vmatmul.msk.bf16.gmra.mxu1 %vm1480_vm6, %v1473_v63  ;;  %v380_v49 = vor.u32 %v379_v52, %v376_v42  ;;  %v395_v24 = vrot.slane %v393_v16, 5  ;;  %v615_v26 = vrot.slane %v613_v10, 4  ;;  %v622_v28 = vshll.u32 %v3156_v17, 16 }
  0x90   : > { %v390_v25 = vor.u32 %v389_v19, %v385_v29  ;;  %v618_v57 = vrot.slane %v616_v20, 5  ;;  %v1015_v31 = vsel %vm2775_vm5, %v1010_v23, %v1014_v7  ;;  %v626_v38 = vshrl.u32 %v3156_v17, 16 }
  0x91   : > { %v381_v35 = vrot.slane %v380_v49, 4  ;;  %v632_v14 = vshll.u32 %v3165_v2, 16  ;;  %v1428_v44 = vunpack.c.l.b16 %v1005_v8  ;;  %v624_v50 = vrot.slane %v622_v28, 5  ;;  %v3194_v3 = vpop.permute.xlu1 %1272 }
  0x92   : > { %v391_v46 = vrot.slane %v390_v25, 4  ;;  %v619_v47 = vor.u32 %v618_v57, %v615_v26  ;;  %v1429_v48 = vunpack.c.l.b16 %v1015_v31  ;;  %v628_v56 = vrot.slane %v626_v38, 4  ;;  %v2147_v31 = vld [vmem:[%s2742_s10 + $0x3c] sm:$0xf] }
  0x93   : > { %1412 = vrot.lane.b32.xlu1 %v2353_v22, %s2638_s20  ;;  %v386_v51 = vsel %vm2775_vm5, %v381_v35, %v385_v29  ;;  %v685_v58 = vshrl.u32 %v2111_v55, 16  ;;  %v634_v60 = vrot.slane %v632_v14, 5  ;;  %v688_v62 = vshll.u32 %v2111_v55, 16 }
  0x94   : > { %v396_v18 = vsel %vm2775_vm5, %v391_v46, %v395_v24  ;;  %v1172_v32 = vunpack.c.l.b16 %v386_v51  ;;  %v620_v36 = vrot.slane %v619_v47, 4  ;;  %v629_v61 = vor.u32 %v628_v56, %v624_v50  ;;  %v3224_v46 = vld [vmem:[%s2742_s10 + $0x40] sm:$0xf]  ;;  %v208_v51 = vld [vmem:[%s2742_s10 + $0x24] sm:$0xf] }
  0x95   : > { %1364 = vrot.lane.b32.xlu0 %v3122_v11, %s2643_s29  ;;  %v1173_v59 = vunpack.c.l.b16 %v396_v18  ;;  %v687_v33 = vrot.slane %v685_v58, 4  ;;  %v694_v54 = vshll.u32 %v3067_v40, 16  ;;  %v698_v0 = vshrl.u32 %v3067_v40, 16 }
  0x96   : > { %1356 = vrot.lane.b32.xlu2 %v3139_v53, %s2643_s29  ;;  %v625_v63 = vsel %vm2775_vm5, %v620_v36, %v624_v50  ;;  %v704_v1 = vshll.u32 %v3070_v41, 16  ;;  %v1438_v11 = vpack.c.b16 %v1429_v48, %v1428_v44  ;;  %v630_v7 = vrot.slane %v629_v61, 4  ;;  %v3229_v48 = vld [vmem:[%s2742_s10 + $0x44] sm:$0x1] }
  0x97   : > { %v1182_v45 = vpack.c.b16 %v1173_v59, %v1172_v32  ;;  %v690_v42 = vrot.slane %v688_v62, 5  ;;  %v3197_v13 = vunpack.c.l.b16 %v625_v63  ;;  %v696_v52 = vrot.slane %v694_v54, 5 }
  0x98   : > { %v700_v53 = vrot.slane %v698_v0, 4  ;;  %v2134_v29 = vrot.slane %v2126_v37, 9  ;;  %v635_v16 = vsel %vm2775_vm5, %v630_v7, %v634_v60  ;;  %v787_v40 = vrot.slane %v3156_v17, 5  ;;  %v2331_v60 = vld [vmem:[%s2742_s10] sm:$0xff] }
  0x99   : > { %v691_v4 = vor.u32 %v690_v42, %v687_v33  ;;  %v790_v41 = vrot.slane %v3165_v2, 5  ;;  %v1295_v10 = vunpack.c.l.b16 %v635_v16  ;;  %v706_v22 = vrot.slane %v704_v1, 5 }
  0x9a   : > { %v3203_v19 = vpop.permute.xlu0 %1224  ;;  %v701_v20 = vor.u32 %v700_v53, %v696_v52  ;;  %v2175_v8 = vrot.slane %v2167_v9, 9  ;;  %v788_v49 = vsel %vm2748_vm4, %v2134_v29, %v787_v40  ;;  %v789_v24 = vrot.slane %v787_v40, 4  ;;  %v216_v40 = vld [vmem:[%s2742_s10 + $0x54] sm:$0xf] }
  0x9b   : > { %1230 = vrot.lane.b32.xlu1 %v3162_v15, %s2639_s21  ;;  %v692_v23 = vrot.slane %v691_v4, 4  ;;  %v1088_v17 = vrot.slane %v3014_v34, 5  ;;  %v1307_v2 = vpack.c.b16 %v1295_v10, %v3197_v13  ;;  %v1334_v26 = vunpack.c.l.b16 %v788_v49  ;;  %v2335_v10 = vld [vmem:[%s2742_s10 + $0x30] sm:$0xff] }
  0x9c   : > { %v702_v25 = vrot.slane %v701_v20, 4  ;;  %v1091_v57 = vrot.slane %v3020_v43, 5  ;;  %v791_v28 = vsel %vm2748_vm4, %v789_v24, %v790_v41  ;;  %v921_v18 = vshrl.u32 %v2147_v31, 16 }
  0x9d   : > { %1452 = vrot.lane.b32.xlu0 %v1438_v11, %s2642_s28  ;;  %v697_v15 = vsel %vm2775_vm5, %v692_v23, %v696_v52  ;;  %v1089_v34 = vsel %vm2748_vm4, %v2175_v8, %v1088_v17  ;;  %v1090_v55 = vrot.slane %v1088_v17, 4  ;;  %v1335_v38 = vunpack.c.l.b16 %v791_v28 }
  0x9e   : > { %1196 = vrot.lane.b32.xlu2 %v1182_v45, %s2641_s27  ;;  %v707_v43 = vsel %vm2775_vm5, %v702_v25, %v706_v22  ;;  %v1300_v35 = vunpack.c.l.b16 %v697_v15  ;;  %v1460_v14 = vunpack.c.l.b16 %v1089_v34  ;;  %v1353_v44 = vpop.permute.xlu2 %1352  ;;  %v924_v59 = vshll.u32 %v2147_v31, 16 }
  0x9f   : > { %v1301_v47 = vunpack.c.l.b16 %v707_v43  ;;  %v1092_v50 = vsel %vm2748_vm4, %v1090_v55, %v1091_v57  ;;  %v1347_v56 = vpack.c.b16 %v1335_v38, %v1334_v26  ;;  %v930_v61 = vshll.u32 %v3224_v46, 16  ;;  %v3252_v26 = vld [vmem:[%s2742_s10 + $0x58] sm:$0xf]  ;;  %v3261_v38 = vld [vmem:[%s2742_s10 + $0x5c] sm:$0x1] }
  0xa0   : > { %v1461_v58 = vunpack.c.l.b16 %v1092_v50  ;;  %v934_v33 = vshrl.u32 %v3224_v46, 16  ;;  %v923_v37 = vrot.slane %v921_v18, 4  ;;  %v940_v63 = vshll.u32 %v3229_v48, 16 }
  0xa1   : > { %v1313_v32 = vpop.permute.xlu1 %1312  ;;  %v1310_v36 = vpack.c.b16 %v1301_v47, %v1300_v35  ;;  %v302_v54 = vshrl.u32 %v208_v51, 16  ;;  %v926_v0 = vrot.slane %v924_v59, 5  ;;  %v932_v1 = vrot.slane %v930_v61, 5 }
  0xa2   : > { %v1474_v62 = vpack.c.b16 %v1461_v58, %v1460_v14  ;;  %v936_v11 = vrot.slane %v934_v33, 4  ;;  %v305_v45 = vshll.u32 %v208_v51, 16  ;;  %v942_v42 = vrot.slane %v940_v63, 5  ;;  %v3272_v33 = vld [vmem:[%s2742_s10 + $0x64] sm:$0xf] }
  0xa3   : > { %1358 = vrot.lane.b32.xlu1 %v1347_v56, %s2643_s29  ;;  %v304_v9 = vrot.slane %v302_v54, 4  ;;  %v311_v13 = vshll.u32 %v3106_v6, 16  ;;  %v315_v52 = vshrl.u32 %v3106_v6, 16  ;;  %v927_v29 = vor.u32 %v926_v0, %v923_v37  ;;  %v3277_v63 = vld [vmem:[%s2742_s10 + $0x68] sm:$0x1] }
  0xa4   : > { %v1185_v7 = vpop.permute.xlu0 %1184  ;;  %2315 = vmatmul.msk.bf16.gmra.mxu1 %vm1480_vm6, %v1474_v62  ;;  %v937_v16 = vor.u32 %v936_v11, %v932_v1  ;;  %v307_v4 = vrot.slane %v305_v45, 5  ;;  %v321_v8 = vshll.u32 %v3111_v21, 16  ;;  %v398_v57 = vshrl.u32 %v216_v40, 16 }
  0xa5   : > { %1318 = vrot.lane.b32.xlu0 %v1307_v2, %s2640_s24  ;;  %v1483_v53 = vsel %vm1480_vm6, %v2331_v60, %v1185_v7  ;;  %v313_v20 = vrot.slane %v311_v13, 5  ;;  %v317_v22 = vrot.slane %v315_v52, 4  ;;  %v928_v23 = vrot.slane %v927_v29, 4  ;;  %v2168_v7 = vld [vmem:[%s2742_s10 + $0x3c] sm:$0xe]  ;;  %v2346_v29 = vld [vmem:[%s2742_s10 + $0x60] sm:$0xff] }
  0xa6   : > { %1324 = vrot.lane.b32.xlu2 %v1310_v36, %s2640_s24  ;;  %v1507_v41 = vsel %vm1505_vm7, %v1483_v53, %v3203_v19  ;;  %v938_v49 = vrot.slane %v937_v16, 4  ;;  %v308_v24 = vor.u32 %v307_v4, %v304_v9  ;;  %v323_v25 = vrot.slane %v321_v8, 5  ;;  %v1233_v19 = vpop.permute.xlu2 %1232 }
  0xa7   : > { %v1524_v6 = vsel %vm1522_vm8, %v1507_v41, %v3194_v3  ;;  %v318_v2 = vor.u32 %v317_v22, %v313_v20  ;;  %v933_v21 = vsel %vm2775_vm5, %v928_v23, %v932_v1  ;;  %v401_v47 = vshll.u32 %v216_v40, 16 }
  0xa8   : > { %v1541_v17 = vsel %vm1539_vm9, %v1524_v6, %v1313_v32  ;;  %v943_v3 = vsel %vm2775_vm5, %v938_v49, %v942_v42  ;;  %v309_v34 = vrot.slane %v308_v24, 4  ;;  %v1422_v31 = vunpack.c.l.b16 %v933_v21  ;;  %v2113_v32 = vld [vmem:[%s2742_s10 + $0x60] sm:$0xf]  ;;  %v2155_v6 = vld [vmem:[%s2742_s10 + $0x6c] sm:$0xf] }
  0xa9   : > { %v1558_v15 = vsel %vm1556_vm10, %v1541_v17, %v1353_v44  ;;  %v1193_v28 = vpop.permute.xlu1 %1192  ;;  %v1423_v43 = vunpack.c.l.b16 %v943_v3  ;;  %v319_v35 = vrot.slane %v318_v2, 4  ;;  %v400_v44 = vrot.slane %v398_v57, 4 }
  0xaa   : > { %v1495_v55 = vsel %vm1480_vm6, %v2335_v10, %v1193_v28  ;;  %v314_v14 = vsel %vm2775_vm5, %v309_v34, %v313_v20  ;;  %v407_v50 = vshll.u32 %v3252_v26, 16  ;;  %v411_v18 = vshrl.u32 %v3252_v26, 16  ;;  %v2342_v28 = vld [vmem:[%s2742_s10 + $0x30] sm:$0xff] }
  0xab   : > { %v1435_v51 = vpack.c.b16 %v1423_v43, %v1422_v31  ;;  %v324_v56 = vsel %vm2775_vm5, %v319_v35, %v323_v25  ;;  %v1166_v58 = vunpack.c.l.b16 %v314_v14  ;;  %v403_v60 = vrot.slane %v401_v47, 5 }
  0xac   : > { %v1167_v36 = vunpack.c.l.b16 %v324_v56  ;;  %v409_v59 = vrot.slane %v407_v50, 5  ;;  %v417_v61 = vshll.u32 %v3261_v38, 16  ;;  %v413_v62 = vrot.slane %v411_v18, 4  ;;  %v3300_v50 = vld [vmem:[%s2742_s10 + $0x70] sm:$0xf] }
  0xad   : > { %1446 = vrot.lane.b32.xlu0 %v1435_v51, %s2642_s28  ;;  %v1515_v37 = vsel %vm1505_vm7, %v1495_v55, %v1233_v19  ;;  %v404_v0 = vor.u32 %v403_v60, %v400_v44  ;;  %v1575_v45 = vsel %vm1573_vm11, %v1558_v15, %v3182_v27  ;;  %v709_v13 = vshrl.u32 %v2113_v32, 16  ;;  %v3308_v18 = vld [vmem:[%s2742_s10 + $0x74] sm:$0x1] }
  0xae   : > { %v1179_v54 = vpack.c.b16 %v1167_v36, %v1166_v58  ;;  %v419_v1 = vrot.slane %v417_v61, 5  ;;  %v414_v42 = vor.u32 %v413_v62, %v409_v59  ;;  %v712_v52 = vshll.u32 %v2113_v32, 16  ;;  %v1361_v8 = vpop.permute.xlu2 %1360  ;;  %v428_v62 = vld [vmem:[%s2742_s10 + $0x54] sm:$0xe] }
  0xaf   : > { %v1441_v11 = vpop.permute.xlu0 %1440  ;;  %v405_v53 = vrot.slane %v404_v0, 4  ;;  %v718_v16 = vshll.u32 %v3272_v33, 16  ;;  %v722_v4 = vshrl.u32 %v3272_v33, 16  ;;  %v728_v40 = vshll.u32 %v3277_v63, 16  ;;  %v2354_v0 = vld [vmem:[%s2742_s10 + $0x6c] sm:$0xff] }
  0xb0   : > { %v1592_v9 = vsel %vm1590_vm12, %v1575_v45, %v1441_v11  ;;  %1190 = vrot.lane.b32.xlu2 %v1179_v54, %s2641_s27  ;;  %v415_v41 = vrot.slane %v414_v42, 4  ;;  %v711_v10 = vrot.slane %v709_v13, 4  ;;  %v714_v20 = vrot.slane %v712_v52, 5 }
  0xb1   : > { %1719 = vmatmul.bf16.vlgmr.msra.gmra.mxu0 %v1592_v9  ;;  %v2176_v22 = vrot.slane %v2168_v7, 9  ;;  %v410_v23 = vsel %vm2775_vm5, %v405_v53, %v409_v59  ;;  %v720_v49 = vrot.slane %v718_v16, 5  ;;  %v724_v24 = vrot.slane %v722_v4, 4  ;;  %v2169_v9 = vld [vmem:[%s2742_s10 + $0x48] sm:$0xe] }
  0xb2   : > { %v1321_v27 = vpop.permute.xlu1 %1320  ;;  %v730_v17 = vrot.slane %v728_v40, 5  ;;  %v420_v2 = vsel %vm2775_vm5, %v415_v41, %v419_v1  ;;  %v1174_v25 = vunpack.c.l.b16 %v410_v23  ;;  %v715_v57 = vor.u32 %v714_v20, %v711_v10  ;;  %v2350_v41 = vld [vmem:[%s2742_s10 + $0x3c] sm:$0xff]  ;;  %v2506_v23 = vld [vmem:[%s2742_s10 + $0x50] sm:$0x1] }
  0xb3   : > { %v1095_v19 = vrot.slane %v3224_v46, 5  ;;  %v1175_v15 = vunpack.c.l.b16 %v420_v2  ;;  %v725_v21 = vor.u32 %v724_v24, %v720_v49  ;;  %v1098_v3 = vrot.slane %v3229_v48, 5 }
  0xb4   : > { %v1017_v34 = vshrl.u32 %v2155_v6, 16  ;;  %v716_v55 = vrot.slane %v715_v57, 4  ;;  %v1020_v35 = vshll.u32 %v2155_v6, 16  ;;  %v1026_v11 = vshll.u32 %v3300_v50, 16 }
  0xb5   : > { %1286 = vrot.lane.b32.xlu0 %v2346_v29, %s2637_s11  ;;  %v1096_v31 = vsel %vm2748_vm4, %v2176_v22, %v1095_v19  ;;  %v1097_v43 = vrot.slane %v1095_v19, 4  ;;  %v1183_v14 = vpack.c.b16 %v1175_v15, %v1174_v25  ;;  %v726_v44 = vrot.slane %v725_v21, 4 }
  0xb6   : > { %v1462_v46 = vunpack.c.l.b16 %v1096_v31  ;;  %v1019_v51 = vrot.slane %v1017_v34, 4  ;;  %v721_v48 = vsel %vm2775_vm5, %v716_v55, %v720_v49  ;;  %v1022_v32 = vrot.slane %v1020_v35, 5  ;;  %v1449_v29 = vpop.permute.xlu2 %1448 }
  0xb7   : > { %v1281_v47 = vpop.permute.xlu0 %1280  ;;  %v1099_v58 = vsel %vm2748_vm4, %v1097_v43, %v1098_v3  ;;  %1198 = vrot.lane.b32.xlu1 %v1183_v14, %s2641_s27  ;;  %v731_v36 = vsel %vm2775_vm5, %v726_v44, %v730_v17  ;;  %v1302_v60 = vunpack.c.l.b16 %v721_v48  ;;  %v1030_v7 = vshrl.u32 %v3300_v50, 16  ;;  %s2324_s27 = sshll.u32 %s2623_s16, 5 }
  0xb8   : > { %v1532_v56 = vsel %vm1522_vm8, %v1515_v37, %v1281_v47  ;;  %1278 = vrot.lane.b32.xlu2 %v2342_v28, %s2637_s11  ;;  %v1463_v59 = vunpack.c.l.b16 %v1099_v58  ;;  %v1303_v37 = vunpack.c.l.b16 %v731_v36  ;;  %v1023_v1 = vor.u32 %v1022_v32, %v1019_v51  ;;  %v2332_v51 = vld [vmem:[%s2742_s10 + $0xc] sm:$0xff]  ;;  %v2170_v36 = vld [vmem:[%s2742_s10 + $0x54] sm:$0xe]  ;;  %s3432_s11 = sand.u32 1, %s2611_s13  }
  0xb9   : > { %v1549_v61 = vsel %vm1539_vm9, %v1532_v56, %v1321_v27  ;;  %v1036_v42 = vshll.u32 %v3308_v18, 16  ;;  %v1028_v53 = vrot.slane %v1026_v11, 5  ;;  %v2096_v16 = vrot.slane %v428_v62, 9  ;;  %s1919_s9 = scalar_lea.sflag [#allocation3], %s3432_s11 }
  0xba   : > { %v3316_v54 = vpop.permute.xlu1 %1186  ;;  %v1475_v45 = vpack.c.b16 %v1463_v59, %v1462_v46  ;;  %v1566_v13 = vsel %vm1556_vm10, %v1549_v61, %v1361_v8  ;;  %v1024_v52 = vrot.slane %v1023_v1, 4  ;;  %v1311_v4 = vpack.c.b16 %v1303_v37, %v1302_v60  ;;  %v2505_v8 = vld [vmem:[%s2742_s10 + $0x4c] sm:$0xf]  ;;  %v2507_v61 = vld [vmem:[%s2742_s10 + $0x58] sm:$0xf] }
  0xbb   : > { %v1032_v40 = vrot.slane %v1030_v7, 4  ;;  %v507_v27 = vrot.slane %v3252_v26, 5  ;;  %v510_v10 = vrot.slane %v3261_v38, 5  ;;  %v2177_v22 = vrot.slane %v2169_v9, 9  ;;  %v2130_v26 = vld [vmem:[%s2742_s10 + $0x60] sm:$0xe] }
  0xbc   : > { %2316 = vmatmul.msk.bf16.gmra.mxu1 %vm1480_vm6, %v1475_v45  ;;  %v1029_v20 = vsel %vm2775_vm5, %v1024_v52, %v1028_v53  ;;  %v1102_v6 = vrot.slane %v2505_v8, 5  ;;  %v1105_v49 = vrot.slane %v2506_v23, 5  ;;  %v1038_v17 = vrot.slane %v1036_v42, 5  ;;  %v2508_v1 = vld [vmem:[%s2742_s10 + $0x5c] sm:$0x1] }
  0xbd   : > { %1414 = vrot.lane.b32.xlu0 %v2354_v0, %s2638_s20  ;;  %v1033_v24 = vor.u32 %v1032_v40, %v1028_v53  ;;  %v508_v25 = vsel %vm2748_vm4, %v2096_v16, %v507_v27  ;;  %v509_v57 = vrot.slane %v507_v27, 4  ;;  %v1430_v19 = vunpack.c.l.b16 %v1029_v20 }
  0xbe   : > { %v1214_v15 = vunpack.c.l.b16 %v508_v25  ;;  %v1104_v28 = vrot.slane %v1102_v6, 4  ;;  %v1103_v55 = vsel %vm2748_vm4, %v2177_v22, %v1102_v6  ;;  %v2138_v14 = vrot.slane %v2130_v26, 9 }
  0xbf   : > { %v1409_v2 = vpop.permute.xlu0 %1408  ;;  %1326 = vrot.lane.b32.xlu1 %v1311_v4, %s2640_s24  ;;  %v1034_v21 = vrot.slane %v1033_v24, 4  ;;  %v511_v34 = vsel %vm2748_vm4, %v509_v57, %v510_v10  ;;  %v815_v44 = vrot.slane %v3272_v33, 5  ;;  %v818_v46 = vrot.slane %v3277_v63, 5  ;;  %v2336_v24 = vld [vmem:[%s2742_s10 + $0x3c] sm:$0xff] }
  0xc0   : > { %v1583_v38 = vsel %vm1573_vm11, %v1566_v13, %v1409_v2  ;;  %1406 = vrot.lane.b32.xlu2 %v2350_v41, %s2638_s20  ;;  %v1215_v43 = vunpack.c.l.b16 %v511_v34  ;;  %v1106_v35 = vsel %vm2748_vm4, %v1104_v28, %v1105_v49  ;;  %v1464_v56 = vunpack.c.l.b16 %v1103_v55 }
  0xc1   : > { %v1604_v3 = vsel %vm1590_vm12, %v1583_v38, %v1449_v29  ;;  %v1039_v47 = vsel %vm2775_vm5, %v1034_v21, %v1038_v17  ;;  %v1465_v58 = vunpack.c.l.b16 %v1106_v35  ;;  %v817_v32 = vrot.slane %v815_v44, 4  ;;  %v2333_v35 = vld [vmem:[%s2742_s10 + $0x18] sm:$0xff] }
  0xc2   : > { %1739 = vmatmul.bf16.vlgmr.msra.gmra.mxu2 %v1604_v3  ;;  %v1275_v31 = vpop.permute.xlu1 %1274  ;;  %v1431_v48 = vunpack.c.l.b16 %v1039_v47  ;;  %v1223_v60 = vpack.c.b16 %v1215_v43, %v1214_v15  ;;  %v2178_v59 = vrot.slane %v2170_v36, 9  ;;  %v1109_v62 = vrot.slane %v2507_v61, 5  ;;  %v1315_v0 = vpop.permute.xlu2 %1314 }
  0xc3   : > { %v816_v33 = vsel %vm2748_vm4, %v2138_v14, %v815_v44  ;;  %v819_v39 = vsel %vm2748_vm4, %v817_v32, %v818_v46  ;;  %v1112_v63 = vrot.slane %v2508_v1, 5  ;;  %v1486_v42 = vsel %vm1480_vm6, %v2332_v51, %v3316_v54  ;;  %v2171_v32 = vld [vmem:[%s2742_s10 + $0x60] sm:$0xe] }
  0xc4   : > { %v1439_v37 = vpack.c.b16 %v1431_v48, %v1430_v19  ;;  %v1110_v45 = vsel %vm2748_vm4, %v2178_v59, %v1109_v62  ;;  %v1111_v7 = vrot.slane %v1109_v62, 4  ;;  %v1476_v9 = vpack.c.b16 %v1465_v58, %v1464_v56 }
  0xc5   : > { %v1466_v13 = vunpack.c.l.b16 %v1110_v45  ;;  %v1342_v53 = vunpack.c.l.b16 %v816_v33  ;;  %v1343_v29 = vunpack.c.l.b16 %v819_v39  ;;  %v1116_v56 = vrot.slane %v3126_v30, 5 }
  0xc6   : > { %v1113_v16 = vsel %vm2748_vm4, %v1111_v7, %v1112_v63  ;;  %v1119_v36 = vrot.slane %v3133_v12, 5  ;;  %v2179_v59 = vrot.slane %v2171_v32, 9  ;;  %v2337_v7 = vld [vmem:[%s2742_s10 + $0x48] sm:$0xff] }
  0xc7   : > { %v1227_v11 = vpop.permute.xlu0 %1226  ;;  %1454 = vrot.lane.b32.xlu1 %v1439_v37, %s2642_s28  ;;  %v1467_v40 = vunpack.c.l.b16 %v1113_v16  ;;  %v1351_v54 = vpack.c.b16 %v1343_v29, %v1342_v53  ;;  %v1118_v61 = vrot.slane %v1116_v56, 4 }
  0xc8   : > { %1238 = vrot.lane.b32.xlu2 %v1223_v60, %s2639_s21  ;;  %v1509_v52 = vsel %vm1505_vm7, %v1486_v42, %v1227_v11  ;;  %s2323_s21 = sshll.u32 %s2619_s15, 4 }
  0xc9   : > { %v1526_v41 = vsel %vm1522_vm8, %v1509_v52, %v1275_v31  ;;  %v1477_v27 = vpack.c.b16 %v1467_v40, %v1466_v13  ;;  %v1120_v33 = vsel %vm2748_vm4, %v1118_v61, %v1119_v36  ;;  %s1935_s28 = sadd.s32 %s2324_s27, %s2323_s21 }
  0xca   : > { %v1403_v4 = vpop.permute.xlu1 %1402  ;;  %v1543_v10 = vsel %vm1539_vm9, %v1526_v41, %v1315_v0  ;;  %v1117_v0 = vsel %vm2748_vm4, %v2179_v59, %v1116_v56  ;;  %v1469_v63 = vunpack.c.l.b16 %v1120_v33 }
  0xcb   : > { %2318 = vmatmul.msk.bf16.vlgmr.msra.gmra.mxu3 %vm1480_vm6, %v1477_v27  ;;  %v1468_v1 = vunpack.c.l.b16 %v1117_v0 }
  0xcc   : > { %2317 = vmatmul.msk.bf16.gmra.mxu1 %vm1480_vm6, %v1476_v9 }
  0xcd   : > { %v1478_v11 = vpack.c.b16 %v1469_v63, %v1468_v1 }
  0xcf   : > { %v1355_v20 = vpop.permute.xlu0 %1354 }
  0xd0   : > { %v1560_v22 = vsel %vm1556_vm10, %v1543_v10, %v1355_v20  ;;  %v1443_v8 = vpop.permute.xlu2 %1442  ;;  %1366 = vrot.lane.b32.xlu2 %v1351_v54, %s2643_s29  ;;  %v1123_v10 = vrot.slane %v3300_v50, 5  ;;  %v2172_v20 = vld [vmem:[%s2742_s10 + $0x6c] sm:$0xe]  ;;  %s2325_s29 = sshll.u32 %s1935_s28, 2 }
  0xd1   : > { %v1577_v6 = vsel %vm1573_vm11, %v1560_v22, %v1403_v4  ;;  %v2180_v22 = vrot.slane %v2172_v20, 9  ;;  %s1937_s6 = scalar_lea.hbm %s3522_s2, %s2325_s29  ;;  %s2529_s29 = scalar_lea.hbm %s3522_s2, 256 }
  0xd2   : > { %v1235_v23 = vpop.permute.xlu1 %1234  ;;  %v1595_v49 = vsel %vm1590_vm12, %v1577_v6, %v1443_v8  ;;  %v1125_v8 = vrot.slane %v1123_v10, 4  ;;  %v1126_v6 = vrot.slane %v3308_v18, 5  ;;  %s1940_s8 = sshll.u32 %s1937_s6, 4  ;;  %s1941_s8 = int_to_ptr.hbm [resolvable:$true] %s1940_s8 }
  0xd3   : > { %1724 = vmatmul.bf16.gmra.mxu0 %v1595_v49 }
  0xd7   : > { %v1195_v17 = vpop.permute.xlu0 %1194 }
  0xd8   : > { %v1283_v2 = vpop.permute.xlu2 %1282  ;;  %v1498_v25 = vsel %vm1480_vm6, %v2336_v24, %v1195_v17 }
  0xd9   : > { %v1517_v26 = vsel %vm1505_vm7, %v1498_v25, %v1235_v23  ;;  %v2334_v23 = vld [vmem:[%s2742_s10 + $0x24] sm:$0xff]  ;;  %v1124_v25 = vsel %vm2748_vm4, %v2180_v22, %v1123_v10 }
  0xda   : > { %v1363_v57 = vpop.permute.xlu1 %1362  ;;  %v1534_v19 = vsel %vm1522_vm8, %v1517_v26, %v1283_v2  ;;  %v1470_v50 = vunpack.c.l.b16 %v1124_v25 }
  0xdb   : > { %2319 = vmatmul.msk.bf16.gmra.mxu3 %vm1480_vm6, %v1478_v11 }
  0xdf   : > { %v1323_v38 = vpop.permute.xlu0 %1322 }
  0xe0   : > { %v1551_v15 = vsel %vm1539_vm9, %v1534_v19, %v1323_v38  ;;  %v1411_v28 = vpop.permute.xlu2 %1410 }
  0xe1   : > { %v1568_v21 = vsel %vm1556_vm10, %v1551_v15, %v1363_v57  ;;  %v1127_v57 = vsel %vm2748_vm4, %v1125_v8, %v1126_v6 }
  0xe2   : > { %v1585_v3 = vsel %vm1573_vm11, %v1568_v21, %v1411_v28  ;;  %v1451_v34 = vpop.permute.xlu1 %1450  ;;  %v1471_v26 = vunpack.c.l.b16 %v1127_v57 }
  0xe3   : > { %v1607_v55 = vsel %vm1590_vm12, %v1585_v3, %v1451_v34 }
  0xe4   : > { %1744 = vmatmul.bf16.gmra.mxu2 %v1607_v55  ;;  %v1479_v15 = vpack.c.b16 %v1471_v26, %v1470_v50 }
  0xe7   : > { %v1189_v31 = vpop.permute.xlu0 %1188 }
  0xe8   : > { %v1229_v43 = vpop.permute.xlu2 %1228  ;;  %v1489_v14 = vsel %vm1480_vm6, %v2333_v35, %v1189_v31 }
  0xe9   : > { %v1511_v46 = vsel %vm1505_vm7, %v1489_v14, %v1229_v43 }
  0xeb   : > { %2320 = vmatmul.msk.bf16.gmra.mxu3 %vm1480_vm6, %v1479_v15 }
  0xed   : > { %v1317_v44 = vpop.permute.xlu1 %1316 }
  0xef   : > { %v1277_v47 = vpop.permute.xlu0 %1276 }
  0xf0   : > { %v1357_v51 = vpop.permute.xlu2 %1356  ;;  %v1528_v48 = vsel %vm1522_vm8, %v1511_v46, %v1277_v47  ;;  %v2338_v46 = vld [vmem:[%s2742_s10 + $0x54] sm:$0xff]  ;;  %s2083_s10 = sshll.u32 %s3432_s11, 6 }
  0xf1   : > { %v1545_v58 = vsel %vm1539_vm9, %v1528_v48, %v1317_v44  ;;  %s3438_s20 = scalar_lea.vmem [#allocation2], %s2083_s10  ;;  %s2523_s10 = sshra.s32 %s1941_s8, 4  ;;  %s2524_s10 = int_to_ptr.hbm [resolvable:$true] %s2523_s10 }
  0xf2   : > { %v1562_v62 = vsel %vm1556_vm10, %v1545_v58, %v1357_v51  ;;  %s1938_s7 = sshll.u32 %s3438_s20, 4  ;;  %s2525_s21 = scalar_lea.hbm %s2524_s10, 64  ;;  %s1939_s7 = int_to_ptr.vmem [resolvable:$true] %s1938_s7 }
  0xf3   : > { %p2526_p13 = scmp.ne.s32.totalorder %s2524_s10, %s2525_s21  ;;  %p2530_p2 = scmp.lt.s32.totalorder %s2524_s10, %s3522_s2 }
  0xf4   : > { %p2531_p4 = scmp.lt.s32.totalorder %s2529_s29, %s2525_s21 }
  0xf5   : > { %v1445_v60 = vpop.permute.xlu1 %1444  ;;  %p2527_p0 = pnand %p2526_p13, %p2716_p3 }
  0xf6   : > { %p2532_p5 = por %p2531_p4, %p2530_p2 }
  0xf7   : > { %v1405_v37 = vpop.permute.xlu0 %1404  ;;  %p2528_p1 = pneg %p2527_p0 }
  0xf8   : > { %v1579_v30 = vsel %vm1573_vm11, %v1562_v62, %v1405_v37  ;;  %v1197_v39 = vpop.permute.xlu2 %1196 }
  0xf9   : > { %v1598_v12 = vsel %vm1590_vm12, %v1579_v30, %v1445_v60  ;;  %v1501_v52 = vsel %vm1480_vm6, %v2337_v7, %v1197_v39  ;;  %p2533_p6 = pnand %p2532_p5, %p2528_p1 }
  0xfa   : > { %1729 = vmatmul.bf16.gmra.mxu0 %v1598_v12 }
  0xfc   : > { %v1769_v42 = vpop.f32.mrf.mxu1 }
  0xfd   : > { %v1285_v45 = vpop.permute.xlu1 %1284 }
  0xff   : > { %v1237_v9 = vpop.permute.xlu0 %1236 }
 0x100   : > { %v1325_v13 = vpop.permute.xlu2 %1324  ;;  %v1519_v53 = vsel %vm1505_vm7, %v1501_v52, %v1237_v9 }
 0x101   : > { %v1536_v4 = vsel %vm1522_vm8, %v1519_v53, %v1285_v45 }
 0x102   : > { %v1553_v41 = vsel %vm1539_vm9, %v1536_v4, %v1325_v13 }
 0x104   : > { %v1771_v40 = vpop.f32.mrf.mxu1 }
 0x105   : > { %v1413_v29 = vpop.permute.xlu1 %1412 }
 0x107   : > { %v1365_v16 = vpop.permute.xlu0 %1364 }
 0x108   : > { %v1570_v54 = vsel %vm1556_vm10, %v1553_v41, %v1365_v16 }
 0x109   : > { %v1587_v24 = vsel %vm1573_vm11, %v1570_v54, %v1413_v29 }
 0x10a   : > { %v1191_v27 = vpop.permute.xlu2 %1190 }
 0x10b   : > { %v1492_v38 = vsel %vm1480_vm6, %v2334_v23, %v1191_v27 }
 0x10c   : > { %v1774_v19 = vpop.f32.mrf.mxu1 }
 0x10d   : > { %v1231_v17 = vpop.permute.xlu1 %1230 }
 0x10e   : > { %v1513_v28 = vsel %vm1505_vm7, %v1492_v38, %v1231_v17 }
 0x10f   : > { %v1453_v49 = vpop.permute.xlu0 %1452 }
 0x110   : > { %v1610_v2 = vsel %vm1590_vm12, %v1587_v24, %v1453_v49 }
 0x111   : > { %1749 = vmatmul.bf16.gmra.mxu2 %v1610_v2 }
 0x112   : > { %v1279_v18 = vpop.permute.xlu2 %1278 }
 0x113   : > { %v1530_v3 = vsel %vm1522_vm8, %v1513_v28, %v1279_v18 }
 0x114   : > { %v1776_v55 = vpop.f32.mrf.mxu1 }
 0x115   : > { %v1359_v5 = vpop.permute.xlu1 %1358 }
 0x117   : > { %v1319_v21 = vpop.permute.xlu0 %1318 }
 0x118   : > { %v1547_v34 = vsel %vm1539_vm9, %v1530_v3, %v1319_v21 }
 0x119   : > { %v1564_v31 = vsel %vm1556_vm10, %v1547_v34, %v1359_v5 }
 0x11a   : > { %v1407_v43 = vpop.permute.xlu2 %1406 }
 0x11b   : > { %v1581_v35 = vsel %vm1573_vm11, %v1564_v31, %v1407_v43 }
 0x11f   : > { %v1447_v14 = vpop.permute.xlu0 %1446 }
 0x120   : > { %v1601_v44 = vsel %vm1590_vm12, %v1581_v35, %v1447_v14 }
 0x121   : > { %1734 = vmatmul.bf16.gmra.mxu0 %v1601_v44  ;;  %v3423_v47 = vpop.f32.mrf.mxu1 }
 0x122   : > { %v1239_v48 = vpop.permute.xlu2 %1238 }
 0x127   : > { %v1287_v56 = vpop.permute.xlu0 %1286 }
 0x129   : > { %v1199_v51 = vpop.permute.xlu1 %1198  ;;  %v3427_v36 = vpop.f32.mrf.mxu1 }
 0x12a   : > { %v1504_v58 = vsel %vm1480_vm6, %v2338_v46, %v1199_v51  ;;  %v1367_v0 = vpop.permute.xlu2 %1366 }
 0x12b   : > { %v1521_v60 = vsel %vm1505_vm7, %v1504_v58, %v1239_v48 }
 0x12c   : > { %v1538_v61 = vsel %vm1522_vm8, %v1521_v60, %v1287_v56 }
 0x12e   : > { %v1720_v32 = vpop.f32.mrf.mxu0 }
 0x12f   : > { %v1770_v59 = vadd.f32 %v1769_v42, %v1720_v32  ;;  %v1415_v30 = vpop.permute.xlu0 %1414 }
 0x131   : > { %v1327_v62 = vpop.permute.xlu1 %1326  ;;  %v1809_v33 = vpack.c.bf16 %v1770_v59, %v1770_v59 }
 0x132   : > { %v1555_v37 = vsel %vm1539_vm9, %v1538_v61, %v1327_v62 }
 0x133   : > { %v1572_v63 = vsel %vm1556_vm10, %v1555_v37, %v1367_v0  ;;  %v1841_v12 = vunpack.c.l.bf16 %v1809_v33 }
 0x134   : > { %v1589_v11 = vsel %vm1573_vm11, %v1572_v63, %v1415_v30 }
 0x135   : > { %v1878_v53 = vmul.f32 %v1841_v12, %v1841_v12 }
 0x136   : > { %v1722_v39 = vpop.f32.mrf.mxu0 }
 0x137   : > { %v1772_v1 = vadd.f32 %v1771_v40, %v1722_v39 }
 0x139   : > { %v1810_v45 = vpack.c.bf16 %v1772_v1, %v1772_v1  ;;  %v2367_v7 = vpack.c.bf16 %v1772_v1, %v1770_v59  ;;  %v1784_v42 = vpop.f32.mrf.mxu1  ;;  %v1455_v9 = vpop.permute.xlu1 %1454 }
 0x13a   : > { %v1613_v52 = vsel %vm1590_vm12, %v1589_v11, %v1455_v9 }
 0x13b   : > { %2368 = vst [vmem:[%s3438_s20] sm:$0xff] %v2367_v7   ;;  %v1842_v13 = vunpack.c.l.bf16 %v1810_v45  ;;  %1754 = vmatmul.bf16.gmra.mxu2 %v1613_v52 }
 0x13d   : > { %v1857_v29 = vadd.f32 %v1842_v13, %v1841_v12  ;;  %v1879_v16 = vmul.f32 %v1842_v13, %v1842_v13 }
 0x13f   : > { %v1894_v4 = vadd.f32 %v1879_v16, %v1878_v53 }
 0x141   : > { %v1786_v40 = vpop.f32.mrf.mxu1 }
 0x145   : > { %v1740_v41 = vpop.f32.mrf.mxu2 }
 0x149   : > { %v1789_v27 = vpop.f32.mrf.mxu1 }
 0x14a   : > { %v1790_v8 = vadd.f32 %v1789_v27, %v1740_v41 }
 0x14d   : > { %v1742_v54 = vpop.f32.mrf.mxu2 }
 0x14e   : > { %v1794_v21 = vpop.f32.mrf.mxu3 }
 0x150   : > { %v1725_v10 = vpop.f32.mrf.mxu0 }
 0x151   : > { %v1775_v20 = vadd.f32 %v1774_v19, %v1725_v10  ;;  %v1791_v22 = vpop.f32.mrf.mxu1 }
 0x152   : > { %v3442_v6 = vadd.f32 %v1791_v22, %v1742_v54 }
 0x153   : > { %v1811_v23 = vpack.c.bf16 %v1775_v20, %v1775_v20 }
 0x154   : > { %v2387_v49 = vpack.c.bf16 %v3442_v6, %v1790_v8  ;;  %v1818_v9 = vpack.c.bf16 %v3442_v6, %v3442_v6 }
 0x155   : > { %v1843_v24 = vunpack.c.l.bf16 %v1811_v23 }
 0x156   : > { %2407 = vst [vmem:[%s3438_s20 + $0x20] sm:$0xff] %v2387_v49   ;;  %v1796_v34 = vpop.f32.mrf.mxu3  ;;  %v1850_v10 = vunpack.c.l.bf16 %v1818_v9 }
 0x157   : > { %v1858_v17 = vadd.f32 %v1857_v29, %v1843_v24  ;;  %v1880_v2 = vmul.f32 %v1843_v24, %v1843_v24 }
 0x158   : > { %v1727_v25 = vpop.f32.mrf.mxu0 }
 0x159   : > { %v1895_v57 = vadd.f32 %v1894_v4, %v1880_v2  ;;  %v1777_v50 = vadd.f32 %v1776_v55, %v1727_v25 }
 0x15b   : > { %v1812_v26 = vpack.c.bf16 %v1777_v50, %v1777_v50  ;;  %v2372_v38 = vpack.c.bf16 %v1777_v50, %v1775_v20 }
 0x15d   : > { %2404 = vst [vmem:[%s3438_s20 + $0x8] sm:$0xff] %v2372_v38   ;;  %v1844_v18 = vunpack.c.l.bf16 %v1812_v26 }
 0x15e   : > { %v1799_v48 = vpop.f32.mrf.mxu3 }
 0x15f   : > { %v1859_v19 = vadd.f32 %v1858_v17, %v1844_v18  ;;  %v1881_v15 = vmul.f32 %v1844_v18, %v1844_v18  ;;  %v1887_v17 = vmul.f32 %v1850_v10, %v1850_v10 }
 0x161   : > { %v1896_v28 = vadd.f32 %v1895_v57, %v1881_v15 }
 0x166   : > { %v1801_v58 = vpop.f32.mrf.mxu3 }
 0x167   : > { %v1745_v3 = vpop.f32.mrf.mxu2 }
 0x168   : > { %v1795_v31 = vadd.f32 %v1794_v21, %v1745_v3 }
 0x16a   : > { %v1819_v4 = vpack.c.bf16 %v1795_v31, %v1795_v31 }
 0x16c   : > { %v1851_v6 = vunpack.c.l.bf16 %v1819_v4 }
 0x16e   : > { %v1888_v50 = vmul.f32 %v1851_v6, %v1851_v6  ;;  %v1804_v3 = vpop.f32.mrf.mxu3 }
 0x16f   : > { %v1747_v5 = vpop.f32.mrf.mxu2 }
 0x170   : > { %v1797_v43 = vadd.f32 %v1796_v34, %v1747_v5 }
 0x172   : > { %v2392_v35 = vpack.c.bf16 %v1797_v43, %v1795_v31  ;;  %v1820_v20 = vpack.c.bf16 %v1797_v43, %v1797_v43 }
 0x174   : > { %2408 = vst [vmem:[%s3438_s20 + $0x28] sm:$0xff] %v2392_v35   ;;  %v1852_v2 = vunpack.c.l.bf16 %v1820_v20 }
 0x176   : > { %v1889_v18 = vmul.f32 %v1852_v2, %v1852_v2 }
 0x177   : > { %v1730_v14 = vpop.f32.mrf.mxu0 }
 0x178   : > { %v1780_v55 = vadd.f32 %v3423_v47, %v1730_v14 }
 0x17a   : > { %v1813_v60 = vpack.c.bf16 %v1780_v55, %v1780_v55 }
 0x17c   : > { %v1845_v30 = vunpack.c.l.bf16 %v1813_v60 }
 0x17e   : > { %v1882_v1 = vmul.f32 %v1845_v30, %v1845_v30  ;;  %v1860_v11 = vadd.f32 %v1859_v19, %v1845_v30 }
 0x17f   : > { %v1732_v44 = vpop.f32.mrf.mxu0 }
 0x180   : > { %v1782_v46 = vadd.f32 %v3427_v36, %v1732_v44  ;;  %v1817_v36 = vpack.c.bf16 %v1790_v8, %v1790_v8  ;;  %v1897_v13 = vadd.f32 %v1896_v28, %v1882_v1 }
 0x182   : > { %v2377_v51 = vpack.c.bf16 %v1782_v46, %v1780_v55  ;;  %v1814_v0 = vpack.c.bf16 %v1782_v46, %v1782_v46  ;;  %v1849_v16 = vunpack.c.l.bf16 %v1817_v36 }
 0x184   : > { %2405 = vst [vmem:[%s3438_s20 + $0x10] sm:$0xff] %v2377_v51   ;;  %v1846_v47 = vunpack.c.l.bf16 %v1814_v0 }
 0x186   : > { %v1883_v45 = vmul.f32 %v1846_v47, %v1846_v47  ;;  %v1861_v52 = vadd.f32 %v1860_v11, %v1846_v47 }
 0x188   : > { %v1898_v41 = vadd.f32 %v1897_v13, %v1883_v45 }
 0x194   : > { %v1750_v56 = vpop.f32.mrf.mxu2 }
 0x195   : > { %v1800_v59 = vadd.f32 %v1799_v48, %v1750_v56  ;;  %v1806_v48 = vpop.f32.mrf.mxu3 }
 0x197   : > { %v1821_v21 = vpack.c.bf16 %v1800_v59, %v1800_v59 }
 0x199   : > { %v1853_v5 = vunpack.c.l.bf16 %v1821_v21 }
 0x19b   : > { %v1890_v14 = vmul.f32 %v1853_v5, %v1853_v5 }
 0x19c   : > { %v1752_v32 = vpop.f32.mrf.mxu2 }
 0x19d   : > { %v1802_v61 = vadd.f32 %v1801_v58, %v1752_v32 }
 0x19e   : > { %v1735_v37 = vpop.f32.mrf.mxu0 }
 0x19f   : > { %v2397_v62 = vpack.c.bf16 %v1802_v61, %v1800_v59  ;;  %v1785_v33 = vadd.f32 %v1784_v42, %v1735_v37  ;;  %v1822_v31 = vpack.c.bf16 %v1802_v61, %v1802_v61 }
 0x1a1   : > { %2409 = vst [vmem:[%s3438_s20 + $0x30] sm:$0xff] %v2397_v62   ;;  %v1815_v39 = vpack.c.bf16 %v1785_v33, %v1785_v33  ;;  %v1854_v44 = vunpack.c.l.bf16 %v1822_v31 }
 0x1a3   : > { %v1847_v63 = vunpack.c.l.bf16 %v1815_v39  ;;  %v1891_v58 = vmul.f32 %v1854_v44, %v1854_v44 }
 0x1a5   : > { %v1884_v53 = vmul.f32 %v1847_v63, %v1847_v63  ;;  %v1862_v27 = vadd.f32 %v1861_v52, %v1847_v63 }
 0x1a6   : > { %v1737_v12 = vpop.f32.mrf.mxu0 }
 0x1a7   : > { %v1787_v7 = vadd.f32 %v1786_v40, %v1737_v12  ;;  %v1899_v22 = vadd.f32 %v1898_v41, %v1884_v53  ;;  %v1886_v40 = vmul.f32 %v1849_v16, %v1849_v16 }
 0x1a9   : > { %v1816_v29 = vpack.c.bf16 %v1787_v7, %v1787_v7  ;;  %v2382_v42 = vpack.c.bf16 %v1787_v7, %v1785_v33 }
 0x1ab   : > { %2406 = vst [vmem:[%s3438_s20 + $0x18] sm:$0xff] %v2382_v42   ;;  %v1848_v54 = vunpack.c.l.bf16 %v1816_v29 }
 0x1ad   : > { %v1863_v8 = vadd.f32 %v1862_v27, %v1848_v54  ;;  %v1885_v23 = vmul.f32 %v1848_v54, %v1848_v54 }
 0x1af   : > { %v1864_v49 = vadd.f32 %v1863_v8, %v1849_v16  ;;  %v1900_v24 = vadd.f32 %v1899_v22, %v1885_v23 }
 0x1b1   : > { %v1865_v25 = vadd.f32 %v1864_v49, %v1850_v10  ;;  %v1901_v57 = vadd.f32 %v1900_v24, %v1886_v40 }
 0x1b3   : > { %v1866_v26 = vadd.f32 %v1865_v25, %v1851_v6  ;;  %v1902_v38 = vadd.f32 %v1901_v57, %v1887_v17 }
 0x1b5   : > { %v1903_v19 = vadd.f32 %v1902_v38, %v1888_v50  ;;  %v1867_v15 = vadd.f32 %v1866_v26, %v1852_v2 }
 0x1b7   : > { %v1904_v28 = vadd.f32 %v1903_v19, %v1889_v18  ;;  %v1868_v55 = vadd.f32 %v1867_v15, %v1853_v5 }
 0x1b9   : > { %v1905_v51 = vadd.f32 %v1904_v28, %v1890_v14  ;;  %v1869_v32 = vadd.f32 %v1868_v55, %v1854_v44 }
 0x1bb   : > { %v1906_v61 = vadd.f32 %v1905_v51, %v1891_v58 }
 0x1be   : > { %v1755_v34 = vpop.f32.mrf.mxu2 }
 0x1bf   : > { %v1805_v43 = vadd.f32 %v1804_v3, %v1755_v34 }
 0x1c1   : > { %v1823_v35 = vpack.c.bf16 %v1805_v43, %v1805_v43 }
 0x1c3   : > { %v1855_v46 = vunpack.c.l.bf16 %v1823_v35 }
 0x1c5   : > { %v1892_v59 = vmul.f32 %v1855_v46, %v1855_v46  ;;  %v1870_v0 = vadd.f32 %v1869_v32, %v1855_v46 }
 0x1c6   : > { %v1757_v56 = vpop.f32.mrf.mxu2 }
 0x1c7   : > { %v1807_v60 = vadd.f32 %v1806_v48, %v1757_v56 }
 0x1c9   : > { %v1824_v62 = vpack.c.bf16 %v1807_v60, %v1807_v60  ;;  %v2402_v37 = vpack.c.bf16 %v1807_v60, %v1805_v43 }
 0x1cb   : > { %2410 = vst [vmem:[%s3438_s20 + $0x38] sm:$0xff] %v2402_v37   ;;  %v1856_v33 = vunpack.c.l.bf16 %v1824_v62 }
 0x1cc   : > { %2536 = shalt.err (!%p2533_p6)
}
 0x1cd   : > { %s2644_s20 = smov 4   ;;  %v1907_v30 = vadd.f32 %v1906_v61, %v1892_v59  ;;  %v1871_v39 = vadd.f32 %v1870_v0, %v1856_v33  ;;  %v1893_v47 = vmul.f32 %v1856_v33, %v1856_v33  ;;  %s2326_s6 = sshll.u32 %s2623_s16, 1  ;;  %vm1915_vm13 = vcmask 1040384  }
 0x1ce   : > { %2421 = dma.vmem_to_hbm [thread:$0]  (%p2716_p3), %s1939_s7, 1024, %s1941_s8, %s1919_s9, %s2640_s24, %s2640_s24, %s2644_s20  }
 0x1cf   : > { %v1872_v1 = vrot.slane %v1871_v39, 4  ;;  %v1908_v63 = vadd.f32 %v1907_v30, %v1893_v47  ;;  %s1953_s10 = sadd.s32 %s2619_s15, %s2326_s6  ;;  %s2084_s21 = sshll.u32 %s3432_s11, 1 }
 0x1d0   : > { %s2327_s27 = sshll.u32 %s1953_s10, 1  ;;  %s190_s16 = scalar_lea.vmem [#allocation4], %s2084_s21 }
 0x1d1   : > { %v1873_v36 = vadd.f32 %v1872_v1, %v1871_v39  ;;  %v1909_v12 = vrot.slane %v1908_v63, 4  ;;  %s1955_s24 = scalar_lea.hbm %s3523_s3, %s2327_s27  ;;  %s1957_s7 = sshll.u32 %s190_s16, 4  ;;  %s1958_s7 = int_to_ptr.vmem [resolvable:$true] %s1957_s7 }
 0x1d2   : > { %s1959_s15 = sshll.u32 %s1955_s24, 4  ;;  %s1924_s8 = scalar_lea.sflag [#allocation5], %s3432_s11  ;;  %s1960_s15 = int_to_ptr.hbm [resolvable:$true] %s1959_s15 }
 0x1d3   : > { %v1874_v11 = vrot.slane %v1873_v36, 2  ;;  %v1910_v45 = vadd.f32 %v1909_v12, %v1908_v63  ;;  %s2551_s9 = sshra.s32 %s1960_s15, 4  ;;  %s2557_s6 = scalar_lea.hbm %s3523_s3, 8  ;;  %s2552_s9 = int_to_ptr.hbm [resolvable:$true] %s2551_s9 }
 0x1d4   : > { %s2553_s4 = scalar_lea.hbm %s2552_s9, 2  ;;  %p2558_p11 = scmp.lt.s32.totalorder %s2552_s9, %s3523_s3 }
 0x1d5   : > { %v1875_v7 = vadd.f32 %v1874_v11, %v1873_v36  ;;  %v1911_v9 = vrot.slane %v1910_v45, 2  ;;  %p2554_p7 = scmp.ne.s32.totalorder %s2552_s9, %s2553_s4  ;;  %p2559_p12 = scmp.lt.s32.totalorder %s2557_s6, %s2553_s4 }
 0x1d7   : > { %v1876_v13 = vrot.slane %v1875_v7, 1  ;;  %v1912_v52 = vadd.f32 %v1911_v9, %v1910_v45  ;;  %p2555_p9 = pnand %p2554_p7, %p2716_p3  ;;  %p2560_p13 = por %p2559_p12, %p2558_p11 }
 0x1d9   : > { %v1913_v53 = vrot.slane %v1912_v52, 1  ;;  %v1877_v29 = vadd.f32 %v1876_v13, %v1875_v7  ;;  %p2556_p10 = pneg %p2555_p9 }
 0x1db   : > { %v1914_v42 = vadd.f32 %v1913_v53, %v1912_v52  ;;  %p2561_p0 = pnand %p2560_p13, %p2556_p10 }
 0x1dd   : > { %v1916_v16 = vsel %vm1915_vm13, %v1877_v29, %v1914_v42 }
 0x1de   : > { %1917 = vst [vmem:[%s190_s16] sm:$0x3] %v1916_v16 }
 0x1df   : > { %2564 = shalt.err (!%p2561_p0)
}
 0x1e0   : > { %2422 = dma.vmem_to_hbm [thread:$0]  (%p2716_p3), %s1958_s7, 32, %s1960_s15, %s1924_s8  }
 0x1e1 PF: > { %p2432_p1 = scmp.ge.s32.totalorder %s2635_s19, 2  ;;  %s1971_s11 = sand.u32 1, %s2607_s12  }
 0x1e2   : > { %s1972_s27 = scalar_lea.sflag [#allocation3], %s1971_s11 }
 0x1e3   : > { %p2426_p2 = pnand %p2432_p1, %p2725_p8 }
 0x1e5   : > { %p2427_p4 = pneg %p2426_p2 }
 0x1e7   : > { %2598 = dma.done.wait (%p2427_p4), %s1972_s27, 1024  }
 0x1e8   : > { %2600 = vsyncadd (%p2427_p4), %s1972_s27, 4294966272  ;;  %s1982_s28 = scalar_lea.sflag [#allocation5], %s1971_s11 }
 0x1e9   : > { %2602 = dma.done.wait (%p2427_p4), %s1982_s28, 32  }
 0x1ea   : > { %2604 = vsyncadd (%p2427_p4), %s1982_s28, 4294967264  ;;  %s20_s19 = sadd.s32 1, %s2635_s19   ;;  %s3530_s12 = smov %s2611_s13 }
 0x1eb   : > { %p17_p5 = scmp.ge.s32.totalorder %s20_s19, 6   ;;  %s3531_s13 = smov %s2615_s14 }
 0x1ec   : > { %s3532_s14 = smov %s2734_s30  ;;  %s3533_s15 = smov %s2627_s17 }
 0x1ed   : > { %s3534_s16 = smov %s2631_s18  ;;  %s3535_s17 = smov %s3538_s22 }
 0x1ee   : > { %s3536_s18 = smov %s3542_s23  ;;  %19 = sbr.rel (!%p17_p5) target bundleno = 7 (0x7), region = 83 }
 0x1f3   :  { %1988 = vsyncpa [#allocation3], 1 }
 0x1f4   :  { %1990 = vsyncpa [#allocation3 + $0x1], 1 }
 0x1f5   :  { %1991 = vsyncpa [#allocation5], 1 }
 0x1f6   :  { %1993 = vsyncpa [#allocation5 + $0x1], 1 }

</bundles_post_ra>
